<compile_context>
chip_gen: v7x
topology: tpu7x:2x2x1
jax: 0.10.0
libtpu: 0.0.40
codegen_flags: <defaults>
</compile_context>

<pallas_src>
import functools
import math

import jax
import jax.numpy as jnp
from jax.experimental import pallas as pl
from jax.experimental.pallas import tpu as pltpu


def _rits_kernel(T, Bp, D, H,
                 inv_den_ref, x_ref, m_ref, d_ref,
                 wtdh_ref, wh_ref, wfeat_ref, wcg_ref, wm_ref, wihc_ref,
                 btdh_ref, dtdx_ref, btdx_ref, bhist_ref, bfeat_ref, bc_ref,
                 blstm_ref,
                 imput_ref, loss_ref,
                 gh_scr, gm_scr, al_scr):
    f32 = jnp.float32
    G = 4 * H

    # --- batched, state-independent prologue over all T*Bp rows ---
    d_all = d_ref[...]                       # (T*Bp, D)
    m_all = m_ref[...]                       # (T*Bp, D)

    gh_scr[...] = jnp.exp(-jnp.maximum(
        jnp.dot(d_all, wtdh_ref[...], preferred_element_type=f32)
        + btdh_ref[...], 0.0))                                        # (T*Bp, H)
    gamma_x_all = jnp.exp(-jnp.maximum(
        d_all * dtdx_ref[...] + btdx_ref[...], 0.0))                  # (T*Bp, D)
    m_proj = jnp.dot(m_all, wm_ref[...], preferred_element_type=f32)  # (T*Bp, 4H+D)
    gm_scr[...] = m_proj[:, :G] + blstm_ref[...]                      # (T*Bp, 4H)
    al_scr[...] = (jnp.dot(gamma_x_all, wcg_ref[...],
                           preferred_element_type=f32)
                   + m_proj[:, G:] + bc_ref[...])                     # (T*Bp, D)

    # Small constant weights held as values across the (short) unrolled loop.
    wh = wh_ref[...]        # (H, 4H + D)   [W_hh.T | W_hist.T]
    wfeat = wfeat_ref[...]  # (D, D)        zero-diag feature regression
    wihc = wihc_ref[...]    # (D, 4H)       W_ih (c_c part)
    bhist = bhist_ref[...]  # (1, D)
    bfeat = bfeat_ref[...]  # (1, D)

    h = jnp.zeros((Bp, H), f32)
    c = jnp.zeros((Bp, H), f32)
    err_acc = jnp.zeros((Bp, D), f32)

    # --- serial recurrence, fully unrolled (T is static) ---
    for t in range(T):
        r0 = t * Bp
        x = x_ref[pl.ds(r0, Bp), :]          # (Bp, D)
        m = m_ref[pl.ds(r0, Bp), :]          # (Bp, D)

        h = h * gh_scr[pl.ds(r0, Bp), :]
        hm = jnp.dot(h, wh, preferred_element_type=f32)   # (Bp, 4H + D)
        gates_h = hm[:, :G]                  # lane-aligned 128-wide slab
        x_h = hm[:, G:] + bhist              # starts at lane-tile boundary

        x_c = m * x + (1.0 - m) * x_h
        z_h = jnp.dot(x_c, wfeat, preferred_element_type=f32) + bfeat

        alpha = al_scr[pl.ds(r0, Bp), :]
        c_h = alpha * z_h + (1.0 - alpha) * x_h
        c_c = m * x + (1.0 - m) * c_h

        # loss: scale by precomputed 1/den (SMEM scalar), single sum at the end
        err_acc = err_acc + (jnp.abs(x - x_h) + jnp.abs(x - z_h)
                             + jnp.abs(x - c_h)) * m * inv_den_ref[t]

        imput_ref[pl.ds(r0, Bp), :] = c_c

        gates = (jnp.dot(c_c, wihc, preferred_element_type=f32)
                 + gates_h + gm_scr[pl.ds(r0, Bp), :])     # (Bp, 4H)
        sg = jax.nn.sigmoid(gates)           # one full-vreg EUP push
        th = jnp.tanh(gates)                 # one full-vreg EUP push
        i_g = sg[:, 0:H]
        f_g = sg[:, H:2 * H]
        g_g = th[:, 2 * H:3 * H]
        o_g = sg[:, 3 * H:4 * H]

        c = f_g * c + i_g * g_g
        h = o_g * jnp.tanh(c)

    loss_ref[0] = jnp.sum(err_acc) / jnp.float32(T)


def init_params(key, input_dim, hidden_size):
    D, H = input_dim, hidden_size
    ks = jax.random.split(key, 14)
    u = lambda k, shape, s: jax.random.uniform(k, shape, jnp.float32, -s, s)
    std_h = 1.0 / math.sqrt(H)
    std_d = 1.0 / math.sqrt(D)
    std_2d = 1.0 / math.sqrt(2 * D)
    return dict(
        W_td_h=u(ks[0], (H, D), std_h), b_td_h=u(ks[1], (H,), std_h),
        W_td_x=u(ks[2], (D, D), std_d), b_td_x=u(ks[3], (D,), std_d),
        W_hist=u(ks[4], (D, H), std_h), b_hist=u(ks[5], (D,), std_h),
        W_feat=u(ks[6], (D, D), std_d), b_feat=u(ks[7], (D,), std_d),
        W_comb=u(ks[8], (D, 2 * D), std_2d), b_comb=u(ks[9], (D,), std_2d),
        W_ih=u(ks[10], (4 * H, 2 * D), std_h), b_ih=u(ks[11], (4 * H,), std_h),
        W_hh=u(ks[12], (4 * H, H), std_h), b_hh=u(ks[13], (4 * H,), std_h),
    )
    # NOTE: self.dropout and self.out are defined in the module but unused in forward.


def rits_forward(params, data, direction, hidden_size):
    x_t = data[direction]['x_t'].astype(jnp.float32)      # (B, T, D)
    masks = data[direction]['masks'].astype(jnp.float32)  # (B, T, D)
    deltas = data[direction]['deltas'].astype(jnp.float32)
    B, T, D = x_t.shape
    H = hidden_size
    G = 4 * H

    Bp = ((B + 7) // 8) * 8          # pad batch to full sublane tiles
    pad = Bp - B

    eye = jnp.eye(D, dtype=jnp.float32)

    # --- weight prep / fusion (glue, done once per call) ---
    wtdh = params['W_td_h'].T                                        # (D, H)
    dtdx = jnp.diagonal(params['W_td_x'])[None, :]                   # (1, D)
    # gate slab first so the 128-wide block is lane-aligned
    wh_fused = jnp.concatenate(
        [params['W_hh'].T, params['W_hist'].T], axis=1)              # (H, 4H+D)
    wfeat = (params['W_feat'] * (1.0 - eye)).T                       # (D, D)
    wcomb_t = params['W_comb'].T                                     # (2D, D)
    wcg = wcomb_t[:D]                                                # (D, D)
    wih_t = params['W_ih'].T                                         # (2D, 4H)
    wihc = wih_t[:D]                                                 # (D, 4H)
    wm_fused = jnp.concatenate([wih_t[D:], wcomb_t[D:]], axis=1)     # (D, 4H+D)

    btdh = params['b_td_h'][None, :]                                 # (1, H)
    btdx = params['b_td_x'][None, :]                                 # (1, D)
    bhist = params['b_hist'][None, :]                                # (1, D)
    bfeat = params['b_feat'][None, :]                                # (1, D)
    bc = params['b_comb'][None, :]                                   # (1, D)
    blstm = (params['b_ih'] + params['b_hh'])[None, :]               # (1, 4H)

    # time-major, batch padded to Bp, flattened: row t*Bp + b == x_t[b, t]
    def prep(a):
        a = jnp.pad(a, ((0, pad), (0, 0), (0, 0)))
        return jnp.transpose(a, (1, 0, 2)).reshape(T * Bp, D)

    x2, m2, d2 = prep(x_t), prep(masks), prep(deltas)

    # per-step loss denominator (uses the ORIGINAL masks; padded rows have m=0)
    inv_den = 1.0 / (jnp.sum(masks, axis=(0, 2)) + 1e-05)            # (T,)

    vmem = pltpu.MemorySpace.VMEM
    smem = pltpu.MemorySpace.SMEM
    n_vmem_in = 16

    imput_flat, loss = pl.pallas_call(
        functools.partial(_rits_kernel, T, Bp, D, H),
        in_specs=[pl.BlockSpec(memory_space=smem)]
                 + [pl.BlockSpec(memory_space=vmem)] * n_vmem_in,
        out_specs=[pl.BlockSpec(memory_space=vmem),
                   pl.BlockSpec(memory_space=smem)],
        out_shape=[jax.ShapeDtypeStruct((T * Bp, D), jnp.float32),
                   jax.ShapeDtypeStruct((1,), jnp.float32)],
        scratch_shapes=[pltpu.VMEM((T * Bp, H), jnp.float32),   # gamma_h
                        pltpu.VMEM((T * Bp, G), jnp.float32),   # m-gates + bias
                        pltpu.VMEM((T * Bp, D), jnp.float32)],  # alpha
    )(inv_den, x2, m2, d2,
      wtdh, wh_fused, wfeat, wcg, wm_fused, wihc,
      btdh, dtdx, btdx, bhist, bfeat, bc, blstm)

    imputations = jnp.transpose(
        imput_flat.reshape(T, Bp, D)[:, :B, :], (1, 0, 2))           # (B, T, D)
    return {'loss': loss[0],
            'imputations': imputations,
            'evals': data[direction]['evals'],
            'eval_masks': data[direction]['eval_masks']}


def rits_reference(params, data, direction, hidden_size):
    """Pure-JAX reference mirroring the PyTorch forward exactly."""
    x_t = data[direction]['x_t'].astype(jnp.float32)
    masks = data[direction]['masks'].astype(jnp.float32)
    deltas = data[direction]['deltas'].astype(jnp.float32)
    B, T, D = x_t.shape
    H = hidden_size
    eye = jnp.eye(D, dtype=jnp.float32)
    h = jnp.zeros((B, H), jnp.float32)
    c = jnp.zeros((B, H), jnp.float32)
    x_loss = jnp.float32(0.0)
    imps = []
    for t in range(T):
        x, m, d = x_t[:, t, :], masks[:, t, :], deltas[:, t, :]
        gamma_h = jnp.exp(-jax.nn.relu(d @ params['W_td_h'].T + params['b_td_h']))
        gamma_x = jnp.exp(-jax.nn.relu(d @ (params['W_td_x'] * eye).T + params['b_td_x']))
        h = h * gamma_h
        x_h = h @ params['W_hist'].T + params['b_hist']
        den = jnp.sum(m) + 1e-05
        x_loss += jnp.sum(jnp.abs(x - x_h) * m) / den
        x_c = m * x + (1 - m) * x_h
        z_h = x_c @ (params['W_feat'] * (1 - eye)).T + params['b_feat']
        x_loss += jnp.sum(jnp.abs(x - z_h) * m) / den
        alpha = jnp.concatenate([gamma_x, m], axis=1) @ params['W_comb'].T + params['b_comb']
        c_h = alpha * z_h + (1 - alpha) * x_h
        x_loss += jnp.sum(jnp.abs(x - c_h) * m) / den
        c_c = m * x + (1 - m) * c_h
        inputs = jnp.concatenate([c_c, m], axis=1)
        gates = (inputs @ params['W_ih'].T + params['b_ih']
                 + h @ params['W_hh'].T + params['b_hh'])
        i_g = jax.nn.sigmoid(gates[:, :H])
        f_g = jax.nn.sigmoid(gates[:, H:2 * H])
        g_g = jnp.tanh(gates[:, 2 * H:3 * H])
        o_g = jax.nn.sigmoid(gates[:, 3 * H:])
        c = f_g * c + i_g * g_g
        h = o_g * jnp.tanh(c)
        imps.append(c_c[:, None, :])
    return {'loss': x_loss / T, 'imputations': jnp.concatenate(imps, axis=1)}


if __name__ == "__main__":
    B, T, D, H = 4, 8, 16, 32  # batch, seq_len, input_dim, hidden_size

    key = jax.random.PRNGKey(0)
    kp, kx, km, kd, ke, kem = jax.random.split(key, 6)
    params = init_params(kp, D, H)

    x_t = jax.random.normal(kx, (B, T, D), jnp.float32)
    masks = (jax.random.uniform(km, (B, T, D)) < 0.7).astype(jnp.float32)
    deltas = jax.random.uniform(kd, (B, T, D), jnp.float32, 0.0, 2.0)
    evals = jax.random.normal(ke, (B, T, D), jnp.float32)
    eval_masks = (jax.random.uniform(kem, (B, T, D)) < 0.2).astype(jnp.float32)

    data = {'forward': {'x_t': x_t, 'masks': masks, 'deltas': deltas,
                        'evals': evals, 'eval_masks': eval_masks}}

    ret = rits_forward(params, data, 'forward', H)
    jax.block_until_ready(ret['loss'])
    jax.block_until_ready(ret['imputations'])

    ref = rits_reference(params, data, 'forward', H)
    assert jnp.allclose(ret['loss'], ref['loss'], rtol=1e-4, atol=1e-4), \
        (ret['loss'], ref['loss'])
    assert jnp.allclose(ret['imputations'], ref['imputations'],
                        rtol=1e-4, atol=1e-4)

    print("KERNEL_OK")
</pallas_src>

<mosaic_0001>
module attributes {stable_mosaic.version = 11 : i64} {
  func.func @_rits_kernel(%arg0: memref<8xf32, #tpu.memory_space<smem>>, %arg1: memref<64x16xf32, #tpu.memory_space<vmem>>, %arg2: memref<64x16xf32, #tpu.memory_space<vmem>>, %arg3: memref<64x16xf32, #tpu.memory_space<vmem>>, %arg4: memref<16x32xf32, #tpu.memory_space<vmem>>, %arg5: memref<32x144xf32, #tpu.memory_space<vmem>>, %arg6: memref<16x16xf32, #tpu.memory_space<vmem>>, %arg7: memref<16x16xf32, #tpu.memory_space<vmem>>, %arg8: memref<16x144xf32, #tpu.memory_space<vmem>>, %arg9: memref<16x128xf32, #tpu.memory_space<vmem>>, %arg10: memref<1x32xf32, #tpu.memory_space<vmem>>, %arg11: memref<1x16xf32, #tpu.memory_space<vmem>>, %arg12: memref<1x16xf32, #tpu.memory_space<vmem>>, %arg13: memref<1x16xf32, #tpu.memory_space<vmem>>, %arg14: memref<1x16xf32, #tpu.memory_space<vmem>>, %arg15: memref<1x16xf32, #tpu.memory_space<vmem>>, %arg16: memref<1x128xf32, #tpu.memory_space<vmem>>, %arg17: memref<64x16xf32, #tpu.memory_space<vmem>>, %arg18: memref<1xf32, #tpu.memory_space<smem>>, %arg19: memref<64x32xf32, #tpu.memory_space<vmem>>, %arg20: memref<64x128xf32, #tpu.memory_space<vmem>>, %arg21: memref<64x16xf32, #tpu.memory_space<vmem>>) attributes {dimension_semantics = [], scalar_prefetch = 0 : i64, scratch_operands = 3 : i64, tpu.core_type = #tpu.core_type<tc>} {
    %c0 = arith.constant 0 : index
    %c0_0 = arith.constant 0 : index
    %0 = vector.load %arg3[%c0, %c0_0] : memref<64x16xf32, #tpu.memory_space<vmem>>, vector<64x16xf32>
    %c0_1 = arith.constant 0 : index
    %c0_2 = arith.constant 0 : index
    %1 = vector.load %arg2[%c0_1, %c0_2] : memref<64x16xf32, #tpu.memory_space<vmem>>, vector<64x16xf32>
    %c0_3 = arith.constant 0 : index
    %c0_4 = arith.constant 0 : index
    %2 = vector.load %arg4[%c0_3, %c0_4] : memref<16x32xf32, #tpu.memory_space<vmem>>, vector<16x32xf32>
    %cst = arith.constant dense<0.000000e+00> : vector<64x32xf32>
    %3 = tpu.matmul %0, %2, %cst {dimension_numbers = #tpu.dot_dimension_numbers<[1], [0], [0], [1], [0, 0, 1, 1], [], []>} : vector<64x16xf32>, vector<16x32xf32>, vector<64x32xf32> -> vector<64x32xf32>
    %c0_5 = arith.constant 0 : index
    %c0_6 = arith.constant 0 : index
    %4 = vector.load %arg10[%c0_5, %c0_6] : memref<1x32xf32, #tpu.memory_space<vmem>>, vector<1x32xf32>
    %5 = vector.broadcast %4 : vector<1x32xf32> to vector<64x32xf32>
    %6 = arith.addf %3, %5 : vector<64x32xf32>
    %cst_7 = arith.constant 0.000000e+00 : f32
    %7 = vector.broadcast %cst_7 : f32 to vector<64x32xf32>
    %8 = arith.maximumf %6, %7 : vector<64x32xf32>
    %cst_8 = arith.constant 0.000000e+00 : f32
    %9 = vector.broadcast %cst_8 : f32 to vector<64x32xf32>
    %10 = arith.subf %9, %8 : vector<64x32xf32>
    %11 = math.exp %10 : vector<64x32xf32>
    %c0_9 = arith.constant 0 : index
    %c0_10 = arith.constant 0 : index
    %12 = vector.load %arg19[%c0_9, %c0_10] : memref<64x32xf32, #tpu.memory_space<vmem>>, vector<64x32xf32>
    tpu.vector_store %arg19[%c0_9, %c0_10], %11 {strides = array<i32>} : memref<64x32xf32, #tpu.memory_space<vmem>>, vector<64x32xf32>,
    %c0_11 = arith.constant 0 : index
    %c0_12 = arith.constant 0 : index
    %13 = vector.load %arg11[%c0_11, %c0_12] : memref<1x16xf32, #tpu.memory_space<vmem>>, vector<1x16xf32>
    %14 = vector.broadcast %13 : vector<1x16xf32> to vector<64x16xf32>
    %15 = arith.mulf %0, %14 : vector<64x16xf32>
    %c0_13 = arith.constant 0 : index
    %c0_14 = arith.constant 0 : index
    %16 = vector.load %arg12[%c0_13, %c0_14] : memref<1x16xf32, #tpu.memory_space<vmem>>, vector<1x16xf32>
    %17 = vector.broadcast %16 : vector<1x16xf32> to vector<64x16xf32>
    %18 = arith.addf %15, %17 : vector<64x16xf32>
    %cst_15 = arith.constant 0.000000e+00 : f32
    %19 = vector.broadcast %cst_15 : f32 to vector<64x16xf32>
    %20 = arith.maximumf %18, %19 : vector<64x16xf32>
    %cst_16 = arith.constant 0.000000e+00 : f32
    %21 = vector.broadcast %cst_16 : f32 to vector<64x16xf32>
    %22 = arith.subf %21, %20 : vector<64x16xf32>
    %23 = math.exp %22 : vector<64x16xf32>
    %c0_17 = arith.constant 0 : index
    %c0_18 = arith.constant 0 : index
    %24 = vector.load %arg8[%c0_17, %c0_18] : memref<16x144xf32, #tpu.memory_space<vmem>>, vector<16x144xf32>
    %cst_19 = arith.constant dense<0.000000e+00> : vector<64x144xf32>
    %25 = tpu.matmul %1, %24, %cst_19 {dimension_numbers = #tpu.dot_dimension_numbers<[1], [0], [0], [1], [0, 0, 1, 1], [], []>} : vector<64x16xf32>, vector<16x144xf32>, vector<64x144xf32> -> vector<64x144xf32>
    %26 = vector.extract_strided_slice %25 {offsets = [0, 0], sizes = [64, 128], strides = [1, 1]} : vector<64x144xf32> to vector<64x128xf32>
    %c0_20 = arith.constant 0 : index
    %c0_21 = arith.constant 0 : index
    %27 = vector.load %arg16[%c0_20, %c0_21] : memref<1x128xf32, #tpu.memory_space<vmem>>, vector<1x128xf32>
    %28 = vector.broadcast %27 : vector<1x128xf32> to vector<64x128xf32>
    %29 = arith.addf %26, %28 : vector<64x128xf32>
    %c0_22 = arith.constant 0 : index
    %c0_23 = arith.constant 0 : index
    %30 = vector.load %arg20[%c0_22, %c0_23] : memref<64x128xf32, #tpu.memory_space<vmem>>, vector<64x128xf32>
    tpu.vector_store %arg20[%c0_22, %c0_23], %29 {strides = array<i32>} : memref<64x128xf32, #tpu.memory_space<vmem>>, vector<64x128xf32>,
    %c0_24 = arith.constant 0 : index
    %c0_25 = arith.constant 0 : index
    %31 = vector.load %arg7[%c0_24, %c0_25] : memref<16x16xf32, #tpu.memory_space<vmem>>, vector<16x16xf32>
    %cst_26 = arith.constant dense<0.000000e+00> : vector<64x16xf32>
    %32 = tpu.matmul %23, %31, %cst_26 {dimension_numbers = #tpu.dot_dimension_numbers<[1], [0], [0], [1], [0, 0, 1, 1], [], []>} : vector<64x16xf32>, vector<16x16xf32>, vector<64x16xf32> -> vector<64x16xf32>
    %33 = vector.extract_strided_slice %25 {offsets = [0, 128], sizes = [64, 16], strides = [1, 1]} : vector<64x144xf32> to vector<64x16xf32>
    %34 = arith.addf %32, %33 : vector<64x16xf32>
    %c0_27 = arith.constant 0 : index
    %c0_28 = arith.constant 0 : index
    %35 = vector.load %arg15[%c0_27, %c0_28] : memref<1x16xf32, #tpu.memory_space<vmem>>, vector<1x16xf32>
    %36 = vector.broadcast %35 : vector<1x16xf32> to vector<64x16xf32>
    %37 = arith.addf %34, %36 : vector<64x16xf32>
    %c0_29 = arith.constant 0 : index
    %c0_30 = arith.constant 0 : index
    %38 = vector.load %arg21[%c0_29, %c0_30] : memref<64x16xf32, #tpu.memory_space<vmem>>, vector<64x16xf32>
    tpu.vector_store %arg21[%c0_29, %c0_30], %37 {strides = array<i32>} : memref<64x16xf32, #tpu.memory_space<vmem>>, vector<64x16xf32>,
    %c0_31 = arith.constant 0 : index
    %c0_32 = arith.constant 0 : index
    %39 = vector.load %arg5[%c0_31, %c0_32] : memref<32x144xf32, #tpu.memory_space<vmem>>, vector<32x144xf32>
    %c0_33 = arith.constant 0 : index
    %c0_34 = arith.constant 0 : index
    %40 = vector.load %arg6[%c0_33, %c0_34] : memref<16x16xf32, #tpu.memory_space<vmem>>, vector<16x16xf32>
    %c0_35 = arith.constant 0 : index
    %c0_36 = arith.constant 0 : index
    %41 = vector.load %arg9[%c0_35, %c0_36] : memref<16x128xf32, #tpu.memory_space<vmem>>, vector<16x128xf32>
    %c0_37 = arith.constant 0 : index
    %c0_38 = arith.constant 0 : index
    %42 = vector.load %arg13[%c0_37, %c0_38] : memref<1x16xf32, #tpu.memory_space<vmem>>, vector<1x16xf32>
    %c0_39 = arith.constant 0 : index
    %c0_40 = arith.constant 0 : index
    %43 = vector.load %arg14[%c0_39, %c0_40] : memref<1x16xf32, #tpu.memory_space<vmem>>, vector<1x16xf32>
    %cst_41 = arith.constant 0.000000e+00 : f32
    %44 = vector.broadcast %cst_41 : f32 to vector<8x32xf32>
    %cst_42 = arith.constant 0.000000e+00 : f32
    %45 = vector.broadcast %cst_42 : f32 to vector<8x32xf32>
    %cst_43 = arith.constant 0.000000e+00 : f32
    %46 = vector.broadcast %cst_43 : f32 to vector<8x16xf32>
    %c0_44 = arith.constant 0 : index
    %c0_45 = arith.constant 0 : index
    %47 = vector.load %arg1[%c0_44, %c0_45] : memref<64x16xf32, #tpu.memory_space<vmem>>, vector<8x16xf32>
    %c0_46 = arith.constant 0 : index
    %c0_47 = arith.constant 0 : index
    %48 = vector.load %arg2[%c0_46, %c0_47] : memref<64x16xf32, #tpu.memory_space<vmem>>, vector<8x16xf32>
    %c0_48 = arith.constant 0 : index
    %c0_49 = arith.constant 0 : index
    %49 = vector.load %arg19[%c0_48, %c0_49] : memref<64x32xf32, #tpu.memory_space<vmem>>, vector<8x32xf32>
    %50 = arith.mulf %44, %49 : vector<8x32xf32>
    %cst_50 = arith.constant dense<0.000000e+00> : vector<8x144xf32>
    %51 = tpu.matmul %50, %39, %cst_50 {dimension_numbers = #tpu.dot_dimension_numbers<[1], [0], [0], [1], [0, 0, 1, 1], [], []>} : vector<8x32xf32>, vector<32x144xf32>, vector<8x144xf32> -> vector<8x144xf32>
    %52 = vector.extract_strided_slice %51 {offsets = [0, 0], sizes = [8, 128], strides = [1, 1]} : vector<8x144xf32> to vector<8x128xf32>
    %53 = vector.extract_strided_slice %51 {offsets = [0, 128], sizes = [8, 16], strides = [1, 1]} : vector<8x144xf32> to vector<8x16xf32>
    %54 = vector.broadcast %42 : vector<1x16xf32> to vector<8x16xf32>
    %55 = arith.addf %53, %54 : vector<8x16xf32>
    %56 = arith.mulf %48, %47 : vector<8x16xf32>
    %cst_51 = arith.constant 1.000000e+00 : f32
    %57 = vector.broadcast %cst_51 : f32 to vector<8x16xf32>
    %58 = arith.subf %57, %48 : vector<8x16xf32>
    %59 = arith.mulf %58, %55 : vector<8x16xf32>
    %60 = arith.addf %56, %59 : vector<8x16xf32>
    %cst_52 = arith.constant dense<0.000000e+00> : vector<8x16xf32>
    %61 = tpu.matmul %60, %40, %cst_52 {dimension_numbers = #tpu.dot_dimension_numbers<[1], [0], [0], [1], [0, 0, 1, 1], [], []>} : vector<8x16xf32>, vector<16x16xf32>, vector<8x16xf32> -> vector<8x16xf32>
    %62 = vector.broadcast %43 : vector<1x16xf32> to vector<8x16xf32>
    %63 = arith.addf %61, %62 : vector<8x16xf32>
    %c0_53 = arith.constant 0 : index
    %c0_54 = arith.constant 0 : index
    %64 = vector.load %arg21[%c0_53, %c0_54] : memref<64x16xf32, #tpu.memory_space<vmem>>, vector<8x16xf32>
    %65 = arith.mulf %64, %63 : vector<8x16xf32>
    %cst_55 = arith.constant 1.000000e+00 : f32
    %66 = vector.broadcast %cst_55 : f32 to vector<8x16xf32>
    %67 = arith.subf %66, %64 : vector<8x16xf32>
    %68 = arith.mulf %67, %55 : vector<8x16xf32>
    %69 = arith.addf %65, %68 : vector<8x16xf32>
    %70 = arith.mulf %48, %47 : vector<8x16xf32>
    %cst_56 = arith.constant 1.000000e+00 : f32
    %71 = vector.broadcast %cst_56 : f32 to vector<8x16xf32>
    %72 = arith.subf %71, %48 : vector<8x16xf32>
    %73 = arith.mulf %72, %69 : vector<8x16xf32>
    %74 = arith.addf %70, %73 : vector<8x16xf32>
    %75 = arith.subf %47, %55 : vector<8x16xf32>
    %76 = math.absf %75 : vector<8x16xf32>
    %77 = arith.subf %47, %63 : vector<8x16xf32>
    %78 = math.absf %77 : vector<8x16xf32>
    %79 = arith.addf %76, %78 : vector<8x16xf32>
    %80 = arith.subf %47, %69 : vector<8x16xf32>
    %81 = math.absf %80 : vector<8x16xf32>
    %82 = arith.addf %79, %81 : vector<8x16xf32>
    %83 = arith.mulf %82, %48 : vector<8x16xf32>
    %c0_57 = arith.constant 0 : index
    %84 = memref.load %arg0[%c0_57] : memref<8xf32, #tpu.memory_space<smem>>
    %85 = vector.broadcast %84 : f32 to vector<8x16xf32>
    %86 = arith.mulf %83, %85 : vector<8x16xf32>
    %87 = arith.addf %46, %86 : vector<8x16xf32>
    %c0_58 = arith.constant 0 : index
    %c0_59 = arith.constant 0 : index
    %88 = vector.load %arg17[%c0_58, %c0_59] : memref<64x16xf32, #tpu.memory_space<vmem>>, vector<8x16xf32>
    tpu.vector_store %arg17[%c0_58, %c0_59], %74 {strides = array<i32>} : memref<64x16xf32, #tpu.memory_space<vmem>>, vector<8x16xf32>,
    %cst_60 = arith.constant dense<0.000000e+00> : vector<8x128xf32>
    %89 = tpu.matmul %74, %41, %cst_60 {dimension_numbers = #tpu.dot_dimension_numbers<[1], [0], [0], [1], [0, 0, 1, 1], [], []>} : vector<8x16xf32>, vector<16x128xf32>, vector<8x128xf32> -> vector<8x128xf32>
    %90 = arith.addf %89, %52 : vector<8x128xf32>
    %c0_61 = arith.constant 0 : index
    %c0_62 = arith.constant 0 : index
    %91 = vector.load %arg20[%c0_61, %c0_62] : memref<64x128xf32, #tpu.memory_space<vmem>>, vector<8x128xf32>
    %92 = arith.addf %90, %91 : vector<8x128xf32>
    %93 = arith.negf %92 : vector<8x128xf32>
    %94 = math.exp %93 : vector<8x128xf32>
    %cst_63 = arith.constant 1.000000e+00 : f32
    %95 = vector.broadcast %cst_63 : f32 to vector<8x128xf32>
    %96 = arith.addf %95, %94 : vector<8x128xf32>
    %97 = arith.divf %95, %96 : vector<8x128xf32>
    %98 = math.tanh %92 : vector<8x128xf32>
    %99 = vector.extract_strided_slice %97 {offsets = [0, 0], sizes = [8, 32], strides = [1, 1]} : vector<8x128xf32> to vector<8x32xf32>
    %100 = vector.extract_strided_slice %97 {offsets = [0, 32], sizes = [8, 32], strides = [1, 1]} : vector<8x128xf32> to vector<8x32xf32>
    %101 = vector.extract_strided_slice %98 {offsets = [0, 64], sizes = [8, 32], strides = [1, 1]} : vector<8x128xf32> to vector<8x32xf32>
    %102 = vector.extract_strided_slice %97 {offsets = [0, 96], sizes = [8, 32], strides = [1, 1]} : vector<8x128xf32> to vector<8x32xf32>
    %103 = arith.mulf %100, %45 : vector<8x32xf32>
    %104 = arith.mulf %99, %101 : vector<8x32xf32>
    %105 = arith.addf %103, %104 : vector<8x32xf32>
    %106 = math.tanh %105 : vector<8x32xf32>
    %107 = arith.mulf %102, %106 : vector<8x32xf32>
    %c8 = arith.constant 8 : index
    %c0_64 = arith.constant 0 : index
    %108 = vector.load %arg1[%c8, %c0_64] : memref<64x16xf32, #tpu.memory_space<vmem>>, vector<8x16xf32>
    %c8_65 = arith.constant 8 : index
    %c0_66 = arith.constant 0 : index
    %109 = vector.load %arg2[%c8_65, %c0_66] : memref<64x16xf32, #tpu.memory_space<vmem>>, vector<8x16xf32>
    %c8_67 = arith.constant 8 : index
    %c0_68 = arith.constant 0 : index
    %110 = vector.load %arg19[%c8_67, %c0_68] : memref<64x32xf32, #tpu.memory_space<vmem>>, vector<8x32xf32>
    %111 = arith.mulf %107, %110 : vector<8x32xf32>
    %cst_69 = arith.constant dense<0.000000e+00> : vector<8x144xf32>
    %112 = tpu.matmul %111, %39, %cst_69 {dimension_numbers = #tpu.dot_dimension_numbers<[1], [0], [0], [1], [0, 0, 1, 1], [], []>} : vector<8x32xf32>, vector<32x144xf32>, vector<8x144xf32> -> vector<8x144xf32>
    %113 = vector.extract_strided_slice %112 {offsets = [0, 0], sizes = [8, 128], strides = [1, 1]} : vector<8x144xf32> to vector<8x128xf32>
    %114 = vector.extract_strided_slice %112 {offsets = [0, 128], sizes = [8, 16], strides = [1, 1]} : vector<8x144xf32> to vector<8x16xf32>
    %115 = vector.broadcast %42 : vector<1x16xf32> to vector<8x16xf32>
    %116 = arith.addf %114, %115 : vector<8x16xf32>
    %117 = arith.mulf %109, %108 : vector<8x16xf32>
    %cst_70 = arith.constant 1.000000e+00 : f32
    %118 = vector.broadcast %cst_70 : f32 to vector<8x16xf32>
    %119 = arith.subf %118, %109 : vector<8x16xf32>
    %120 = arith.mulf %119, %116 : vector<8x16xf32>
    %121 = arith.addf %117, %120 : vector<8x16xf32>
    %cst_71 = arith.constant dense<0.000000e+00> : vector<8x16xf32>
    %122 = tpu.matmul %121, %40, %cst_71 {dimension_numbers = #tpu.dot_dimension_numbers<[1], [0], [0], [1], [0, 0, 1, 1], [], []>} : vector<8x16xf32>, vector<16x16xf32>, vector<8x16xf32> -> vector<8x16xf32>
    %123 = vector.broadcast %43 : vector<1x16xf32> to vector<8x16xf32>
    %124 = arith.addf %122, %123 : vector<8x16xf32>
    %c8_72 = arith.constant 8 : index
    %c0_73 = arith.constant 0 : index
    %125 = vector.load %arg21[%c8_72, %c0_73] : memref<64x16xf32, #tpu.memory_space<vmem>>, vector<8x16xf32>
    %126 = arith.mulf %125, %124 : vector<8x16xf32>
    %cst_74 = arith.constant 1.000000e+00 : f32
    %127 = vector.broadcast %cst_74 : f32 to vector<8x16xf32>
    %128 = arith.subf %127, %125 : vector<8x16xf32>
    %129 = arith.mulf %128, %116 : vector<8x16xf32>
    %130 = arith.addf %126, %129 : vector<8x16xf32>
    %131 = arith.mulf %109, %108 : vector<8x16xf32>
    %cst_75 = arith.constant 1.000000e+00 : f32
    %132 = vector.broadcast %cst_75 : f32 to vector<8x16xf32>
    %133 = arith.subf %132, %109 : vector<8x16xf32>
    %134 = arith.mulf %133, %130 : vector<8x16xf32>
    %135 = arith.addf %131, %134 : vector<8x16xf32>
    %136 = arith.subf %108, %116 : vector<8x16xf32>
    %137 = math.absf %136 : vector<8x16xf32>
    %138 = arith.subf %108, %124 : vector<8x16xf32>
    %139 = math.absf %138 : vector<8x16xf32>
    %140 = arith.addf %137, %139 : vector<8x16xf32>
    %141 = arith.subf %108, %130 : vector<8x16xf32>
    %142 = math.absf %141 : vector<8x16xf32>
    %143 = arith.addf %140, %142 : vector<8x16xf32>
    %144 = arith.mulf %143, %109 : vector<8x16xf32>
    %c1 = arith.constant 1 : index
    %145 = memref.load %arg0[%c1] : memref<8xf32, #tpu.memory_space<smem>>
    %146 = vector.broadcast %145 : f32 to vector<8x16xf32>
    %147 = arith.mulf %144, %146 : vector<8x16xf32>
    %148 = arith.addf %87, %147 : vector<8x16xf32>
    %c8_76 = arith.constant 8 : index
    %c0_77 = arith.constant 0 : index
    %149 = vector.load %arg17[%c8_76, %c0_77] : memref<64x16xf32, #tpu.memory_space<vmem>>, vector<8x16xf32>
    tpu.vector_store %arg17[%c8_76, %c0_77], %135 {strides = array<i32>} : memref<64x16xf32, #tpu.memory_space<vmem>>, vector<8x16xf32>,
    %cst_78 = arith.constant dense<0.000000e+00> : vector<8x128xf32>
    %150 = tpu.matmul %135, %41, %cst_78 {dimension_numbers = #tpu.dot_dimension_numbers<[1], [0], [0], [1], [0, 0, 1, 1], [], []>} : vector<8x16xf32>, vector<16x128xf32>, vector<8x128xf32> -> vector<8x128xf32>
    %151 = arith.addf %150, %113 : vector<8x128xf32>
    %c8_79 = arith.constant 8 : index
    %c0_80 = arith.constant 0 : index
    %152 = vector.load %arg20[%c8_79, %c0_80] : memref<64x128xf32, #tpu.memory_space<vmem>>, vector<8x128xf32>
    %153 = arith.addf %151, %152 : vector<8x128xf32>
    %154 = arith.negf %153 : vector<8x128xf32>
    %155 = math.exp %154 : vector<8x128xf32>
    %cst_81 = arith.constant 1.000000e+00 : f32
    %156 = vector.broadcast %cst_81 : f32 to vector<8x128xf32>
    %157 = arith.addf %156, %155 : vector<8x128xf32>
    %158 = arith.divf %156, %157 : vector<8x128xf32>
    %159 = math.tanh %153 : vector<8x128xf32>
    %160 = vector.extract_strided_slice %158 {offsets = [0, 0], sizes = [8, 32], strides = [1, 1]} : vector<8x128xf32> to vector<8x32xf32>
    %161 = vector.extract_strided_slice %158 {offsets = [0, 32], sizes = [8, 32], strides = [1, 1]} : vector<8x128xf32> to vector<8x32xf32>
    %162 = vector.extract_strided_slice %159 {offsets = [0, 64], sizes = [8, 32], strides = [1, 1]} : vector<8x128xf32> to vector<8x32xf32>
    %163 = vector.extract_strided_slice %158 {offsets = [0, 96], sizes = [8, 32], strides = [1, 1]} : vector<8x128xf32> to vector<8x32xf32>
    %164 = arith.mulf %161, %105 : vector<8x32xf32>
    %165 = arith.mulf %160, %162 : vector<8x32xf32>
    %166 = arith.addf %164, %165 : vector<8x32xf32>
    %167 = math.tanh %166 : vector<8x32xf32>
    %168 = arith.mulf %163, %167 : vector<8x32xf32>
    %c16 = arith.constant 16 : index
    %c0_82 = arith.constant 0 : index
    %169 = vector.load %arg1[%c16, %c0_82] : memref<64x16xf32, #tpu.memory_space<vmem>>, vector<8x16xf32>
    %c16_83 = arith.constant 16 : index
    %c0_84 = arith.constant 0 : index
    %170 = vector.load %arg2[%c16_83, %c0_84] : memref<64x16xf32, #tpu.memory_space<vmem>>, vector<8x16xf32>
    %c16_85 = arith.constant 16 : index
    %c0_86 = arith.constant 0 : index
    %171 = vector.load %arg19[%c16_85, %c0_86] : memref<64x32xf32, #tpu.memory_space<vmem>>, vector<8x32xf32>
    %172 = arith.mulf %168, %171 : vector<8x32xf32>
    %cst_87 = arith.constant dense<0.000000e+00> : vector<8x144xf32>
    %173 = tpu.matmul %172, %39, %cst_87 {dimension_numbers = #tpu.dot_dimension_numbers<[1], [0], [0], [1], [0, 0, 1, 1], [], []>} : vector<8x32xf32>, vector<32x144xf32>, vector<8x144xf32> -> vector<8x144xf32>
    %174 = vector.extract_strided_slice %173 {offsets = [0, 0], sizes = [8, 128], strides = [1, 1]} : vector<8x144xf32> to vector<8x128xf32>
    %175 = vector.extract_strided_slice %173 {offsets = [0, 128], sizes = [8, 16], strides = [1, 1]} : vector<8x144xf32> to vector<8x16xf32>
    %176 = vector.broadcast %42 : vector<1x16xf32> to vector<8x16xf32>
    %177 = arith.addf %175, %176 : vector<8x16xf32>
    %178 = arith.mulf %170, %169 : vector<8x16xf32>
    %cst_88 = arith.constant 1.000000e+00 : f32
    %179 = vector.broadcast %cst_88 : f32 to vector<8x16xf32>
    %180 = arith.subf %179, %170 : vector<8x16xf32>
    %181 = arith.mulf %180, %177 : vector<8x16xf32>
    %182 = arith.addf %178, %181 : vector<8x16xf32>
    %cst_89 = arith.constant dense<0.000000e+00> : vector<8x16xf32>
    %183 = tpu.matmul %182, %40, %cst_89 {dimension_numbers = #tpu.dot_dimension_numbers<[1], [0], [0], [1], [0, 0, 1, 1], [], []>} : vector<8x16xf32>, vector<16x16xf32>, vector<8x16xf32> -> vector<8x16xf32>
    %184 = vector.broadcast %43 : vector<1x16xf32> to vector<8x16xf32>
    %185 = arith.addf %183, %184 : vector<8x16xf32>
    %c16_90 = arith.constant 16 : index
    %c0_91 = arith.constant 0 : index
    %186 = vector.load %arg21[%c16_90, %c0_91] : memref<64x16xf32, #tpu.memory_space<vmem>>, vector<8x16xf32>
    %187 = arith.mulf %186, %185 : vector<8x16xf32>
    %cst_92 = arith.constant 1.000000e+00 : f32
    %188 = vector.broadcast %cst_92 : f32 to vector<8x16xf32>
    %189 = arith.subf %188, %186 : vector<8x16xf32>
    %190 = arith.mulf %189, %177 : vector<8x16xf32>
    %191 = arith.addf %187, %190 : vector<8x16xf32>
    %192 = arith.mulf %170, %169 : vector<8x16xf32>
    %cst_93 = arith.constant 1.000000e+00 : f32
    %193 = vector.broadcast %cst_93 : f32 to vector<8x16xf32>
    %194 = arith.subf %193, %170 : vector<8x16xf32>
    %195 = arith.mulf %194, %191 : vector<8x16xf32>
    %196 = arith.addf %192, %195 : vector<8x16xf32>
    %197 = arith.subf %169, %177 : vector<8x16xf32>
    %198 = math.absf %197 : vector<8x16xf32>
    %199 = arith.subf %169, %185 : vector<8x16xf32>
    %200 = math.absf %199 : vector<8x16xf32>
    %201 = arith.addf %198, %200 : vector<8x16xf32>
    %202 = arith.subf %169, %191 : vector<8x16xf32>
    %203 = math.absf %202 : vector<8x16xf32>
    %204 = arith.addf %201, %203 : vector<8x16xf32>
    %205 = arith.mulf %204, %170 : vector<8x16xf32>
    %c2 = arith.constant 2 : index
    %206 = memref.load %arg0[%c2] : memref<8xf32, #tpu.memory_space<smem>>
    %207 = vector.broadcast %206 : f32 to vector<8x16xf32>
    %208 = arith.mulf %205, %207 : vector<8x16xf32>
    %209 = arith.addf %148, %208 : vector<8x16xf32>
    %c16_94 = arith.constant 16 : index
    %c0_95 = arith.constant 0 : index
    %210 = vector.load %arg17[%c16_94, %c0_95] : memref<64x16xf32, #tpu.memory_space<vmem>>, vector<8x16xf32>
    tpu.vector_store %arg17[%c16_94, %c0_95], %196 {strides = array<i32>} : memref<64x16xf32, #tpu.memory_space<vmem>>, vector<8x16xf32>,
    %cst_96 = arith.constant dense<0.000000e+00> : vector<8x128xf32>
    %211 = tpu.matmul %196, %41, %cst_96 {dimension_numbers = #tpu.dot_dimension_numbers<[1], [0], [0], [1], [0, 0, 1, 1], [], []>} : vector<8x16xf32>, vector<16x128xf32>, vector<8x128xf32> -> vector<8x128xf32>
    %212 = arith.addf %211, %174 : vector<8x128xf32>
    %c16_97 = arith.constant 16 : index
    %c0_98 = arith.constant 0 : index
    %213 = vector.load %arg20[%c16_97, %c0_98] : memref<64x128xf32, #tpu.memory_space<vmem>>, vector<8x128xf32>
    %214 = arith.addf %212, %213 : vector<8x128xf32>
    %215 = arith.negf %214 : vector<8x128xf32>
    %216 = math.exp %215 : vector<8x128xf32>
    %cst_99 = arith.constant 1.000000e+00 : f32
    %217 = vector.broadcast %cst_99 : f32 to vector<8x128xf32>
    %218 = arith.addf %217, %216 : vector<8x128xf32>
    %219 = arith.divf %217, %218 : vector<8x128xf32>
    %220 = math.tanh %214 : vector<8x128xf32>
    %221 = vector.extract_strided_slice %219 {offsets = [0, 0], sizes = [8, 32], strides = [1, 1]} : vector<8x128xf32> to vector<8x32xf32>
    %222 = vector.extract_strided_slice %219 {offsets = [0, 32], sizes = [8, 32], strides = [1, 1]} : vector<8x128xf32> to vector<8x32xf32>
    %223 = vector.extract_strided_slice %220 {offsets = [0, 64], sizes = [8, 32], strides = [1, 1]} : vector<8x128xf32> to vector<8x32xf32>
    %224 = vector.extract_strided_slice %219 {offsets = [0, 96], sizes = [8, 32], strides = [1, 1]} : vector<8x128xf32> to vector<8x32xf32>
    %225 = arith.mulf %222, %166 : vector<8x32xf32>
    %226 = arith.mulf %221, %223 : vector<8x32xf32>
    %227 = arith.addf %225, %226 : vector<8x32xf32>
    %228 = math.tanh %227 : vector<8x32xf32>
    %229 = arith.mulf %224, %228 : vector<8x32xf32>
    %c24 = arith.constant 24 : index
    %c0_100 = arith.constant 0 : index
    %230 = vector.load %arg1[%c24, %c0_100] : memref<64x16xf32, #tpu.memory_space<vmem>>, vector<8x16xf32>
    %c24_101 = arith.constant 24 : index
    %c0_102 = arith.constant 0 : index
    %231 = vector.load %arg2[%c24_101, %c0_102] : memref<64x16xf32, #tpu.memory_space<vmem>>, vector<8x16xf32>
    %c24_103 = arith.constant 24 : index
    %c0_104 = arith.constant 0 : index
    %232 = vector.load %arg19[%c24_103, %c0_104] : memref<64x32xf32, #tpu.memory_space<vmem>>, vector<8x32xf32>
    %233 = arith.mulf %229, %232 : vector<8x32xf32>
    %cst_105 = arith.constant dense<0.000000e+00> : vector<8x144xf32>
    %234 = tpu.matmul %233, %39, %cst_105 {dimension_numbers = #tpu.dot_dimension_numbers<[1], [0], [0], [1], [0, 0, 1, 1], [], []>} : vector<8x32xf32>, vector<32x144xf32>, vector<8x144xf32> -> vector<8x144xf32>
    %235 = vector.extract_strided_slice %234 {offsets = [0, 0], sizes = [8, 128], strides = [1, 1]} : vector<8x144xf32> to vector<8x128xf32>
    %236 = vector.extract_strided_slice %234 {offsets = [0, 128], sizes = [8, 16], strides = [1, 1]} : vector<8x144xf32> to vector<8x16xf32>
    %237 = vector.broadcast %42 : vector<1x16xf32> to vector<8x16xf32>
    %238 = arith.addf %236, %237 : vector<8x16xf32>
    %239 = arith.mulf %231, %230 : vector<8x16xf32>
    %cst_106 = arith.constant 1.000000e+00 : f32
    %240 = vector.broadcast %cst_106 : f32 to vector<8x16xf32>
    %241 = arith.subf %240, %231 : vector<8x16xf32>
    %242 = arith.mulf %241, %238 : vector<8x16xf32>
    %243 = arith.addf %239, %242 : vector<8x16xf32>
    %cst_107 = arith.constant dense<0.000000e+00> : vector<8x16xf32>
    %244 = tpu.matmul %243, %40, %cst_107 {dimension_numbers = #tpu.dot_dimension_numbers<[1], [0], [0], [1], [0, 0, 1, 1], [], []>} : vector<8x16xf32>, vector<16x16xf32>, vector<8x16xf32> -> vector<8x16xf32>
    %245 = vector.broadcast %43 : vector<1x16xf32> to vector<8x16xf32>
    %246 = arith.addf %244, %245 : vector<8x16xf32>
    %c24_108 = arith.constant 24 : index
    %c0_109 = arith.constant 0 : index
    %247 = vector.load %arg21[%c24_108, %c0_109] : memref<64x16xf32, #tpu.memory_space<vmem>>, vector<8x16xf32>
    %248 = arith.mulf %247, %246 : vector<8x16xf32>
    %cst_110 = arith.constant 1.000000e+00 : f32
    %249 = vector.broadcast %cst_110 : f32 to vector<8x16xf32>
    %250 = arith.subf %249, %247 : vector<8x16xf32>
    %251 = arith.mulf %250, %238 : vector<8x16xf32>
    %252 = arith.addf %248, %251 : vector<8x16xf32>
    %253 = arith.mulf %231, %230 : vector<8x16xf32>
    %cst_111 = arith.constant 1.000000e+00 : f32
    %254 = vector.broadcast %cst_111 : f32 to vector<8x16xf32>
    %255 = arith.subf %254, %231 : vector<8x16xf32>
    %256 = arith.mulf %255, %252 : vector<8x16xf32>
    %257 = arith.addf %253, %256 : vector<8x16xf32>
    %258 = arith.subf %230, %238 : vector<8x16xf32>
    %259 = math.absf %258 : vector<8x16xf32>
    %260 = arith.subf %230, %246 : vector<8x16xf32>
    %261 = math.absf %260 : vector<8x16xf32>
    %262 = arith.addf %259, %261 : vector<8x16xf32>
    %263 = arith.subf %230, %252 : vector<8x16xf32>
    %264 = math.absf %263 : vector<8x16xf32>
    %265 = arith.addf %262, %264 : vector<8x16xf32>
    %266 = arith.mulf %265, %231 : vector<8x16xf32>
    %c3 = arith.constant 3 : index
    %267 = memref.load %arg0[%c3] : memref<8xf32, #tpu.memory_space<smem>>
    %268 = vector.broadcast %267 : f32 to vector<8x16xf32>
    %269 = arith.mulf %266, %268 : vector<8x16xf32>
    %270 = arith.addf %209, %269 : vector<8x16xf32>
    %c24_112 = arith.constant 24 : index
    %c0_113 = arith.constant 0 : index
    %271 = vector.load %arg17[%c24_112, %c0_113] : memref<64x16xf32, #tpu.memory_space<vmem>>, vector<8x16xf32>
    tpu.vector_store %arg17[%c24_112, %c0_113], %257 {strides = array<i32>} : memref<64x16xf32, #tpu.memory_space<vmem>>, vector<8x16xf32>,
    %cst_114 = arith.constant dense<0.000000e+00> : vector<8x128xf32>
    %272 = tpu.matmul %257, %41, %cst_114 {dimension_numbers = #tpu.dot_dimension_numbers<[1], [0], [0], [1], [0, 0, 1, 1], [], []>} : vector<8x16xf32>, vector<16x128xf32>, vector<8x128xf32> -> vector<8x128xf32>
    %273 = arith.addf %272, %235 : vector<8x128xf32>
    %c24_115 = arith.constant 24 : index
    %c0_116 = arith.constant 0 : index
    %274 = vector.load %arg20[%c24_115, %c0_116] : memref<64x128xf32, #tpu.memory_space<vmem>>, vector<8x128xf32>
    %275 = arith.addf %273, %274 : vector<8x128xf32>
    %276 = arith.negf %275 : vector<8x128xf32>
    %277 = math.exp %276 : vector<8x128xf32>
    %cst_117 = arith.constant 1.000000e+00 : f32
    %278 = vector.broadcast %cst_117 : f32 to vector<8x128xf32>
    %279 = arith.addf %278, %277 : vector<8x128xf32>
    %280 = arith.divf %278, %279 : vector<8x128xf32>
    %281 = math.tanh %275 : vector<8x128xf32>
    %282 = vector.extract_strided_slice %280 {offsets = [0, 0], sizes = [8, 32], strides = [1, 1]} : vector<8x128xf32> to vector<8x32xf32>
    %283 = vector.extract_strided_slice %280 {offsets = [0, 32], sizes = [8, 32], strides = [1, 1]} : vector<8x128xf32> to vector<8x32xf32>
    %284 = vector.extract_strided_slice %281 {offsets = [0, 64], sizes = [8, 32], strides = [1, 1]} : vector<8x128xf32> to vector<8x32xf32>
    %285 = vector.extract_strided_slice %280 {offsets = [0, 96], sizes = [8, 32], strides = [1, 1]} : vector<8x128xf32> to vector<8x32xf32>
    %286 = arith.mulf %283, %227 : vector<8x32xf32>
    %287 = arith.mulf %282, %284 : vector<8x32xf32>
    %288 = arith.addf %286, %287 : vector<8x32xf32>
    %289 = math.tanh %288 : vector<8x32xf32>
    %290 = arith.mulf %285, %289 : vector<8x32xf32>
    %c32 = arith.constant 32 : index
    %c0_118 = arith.constant 0 : index
    %291 = vector.load %arg1[%c32, %c0_118] : memref<64x16xf32, #tpu.memory_space<vmem>>, vector<8x16xf32>
    %c32_119 = arith.constant 32 : index
    %c0_120 = arith.constant 0 : index
    %292 = vector.load %arg2[%c32_119, %c0_120] : memref<64x16xf32, #tpu.memory_space<vmem>>, vector<8x16xf32>
    %c32_121 = arith.constant 32 : index
    %c0_122 = arith.constant 0 : index
    %293 = vector.load %arg19[%c32_121, %c0_122] : memref<64x32xf32, #tpu.memory_space<vmem>>, vector<8x32xf32>
    %294 = arith.mulf %290, %293 : vector<8x32xf32>
    %cst_123 = arith.constant dense<0.000000e+00> : vector<8x144xf32>
    %295 = tpu.matmul %294, %39, %cst_123 {dimension_numbers = #tpu.dot_dimension_numbers<[1], [0], [0], [1], [0, 0, 1, 1], [], []>} : vector<8x32xf32>, vector<32x144xf32>, vector<8x144xf32> -> vector<8x144xf32>
    %296 = vector.extract_strided_slice %295 {offsets = [0, 0], sizes = [8, 128], strides = [1, 1]} : vector<8x144xf32> to vector<8x128xf32>
    %297 = vector.extract_strided_slice %295 {offsets = [0, 128], sizes = [8, 16], strides = [1, 1]} : vector<8x144xf32> to vector<8x16xf32>
    %298 = vector.broadcast %42 : vector<1x16xf32> to vector<8x16xf32>
    %299 = arith.addf %297, %298 : vector<8x16xf32>
    %300 = arith.mulf %292, %291 : vector<8x16xf32>
    %cst_124 = arith.constant 1.000000e+00 : f32
    %301 = vector.broadcast %cst_124 : f32 to vector<8x16xf32>
    %302 = arith.subf %301, %292 : vector<8x16xf32>
    %303 = arith.mulf %302, %299 : vector<8x16xf32>
    %304 = arith.addf %300, %303 : vector<8x16xf32>
    %cst_125 = arith.constant dense<0.000000e+00> : vector<8x16xf32>
    %305 = tpu.matmul %304, %40, %cst_125 {dimension_numbers = #tpu.dot_dimension_numbers<[1], [0], [0], [1], [0, 0, 1, 1], [], []>} : vector<8x16xf32>, vector<16x16xf32>, vector<8x16xf32> -> vector<8x16xf32>
    %306 = vector.broadcast %43 : vector<1x16xf32> to vector<8x16xf32>
    %307 = arith.addf %305, %306 : vector<8x16xf32>
    %c32_126 = arith.constant 32 : index
    %c0_127 = arith.constant 0 : index
    %308 = vector.load %arg21[%c32_126, %c0_127] : memref<64x16xf32, #tpu.memory_space<vmem>>, vector<8x16xf32>
    %309 = arith.mulf %308, %307 : vector<8x16xf32>
    %cst_128 = arith.constant 1.000000e+00 : f32
    %310 = vector.broadcast %cst_128 : f32 to vector<8x16xf32>
    %311 = arith.subf %310, %308 : vector<8x16xf32>
    %312 = arith.mulf %311, %299 : vector<8x16xf32>
    %313 = arith.addf %309, %312 : vector<8x16xf32>
    %314 = arith.mulf %292, %291 : vector<8x16xf32>
    %cst_129 = arith.constant 1.000000e+00 : f32
    %315 = vector.broadcast %cst_129 : f32 to vector<8x16xf32>
    %316 = arith.subf %315, %292 : vector<8x16xf32>
    %317 = arith.mulf %316, %313 : vector<8x16xf32>
    %318 = arith.addf %314, %317 : vector<8x16xf32>
    %319 = arith.subf %291, %299 : vector<8x16xf32>
    %320 = math.absf %319 : vector<8x16xf32>
    %321 = arith.subf %291, %307 : vector<8x16xf32>
    %322 = math.absf %321 : vector<8x16xf32>
    %323 = arith.addf %320, %322 : vector<8x16xf32>
    %324 = arith.subf %291, %313 : vector<8x16xf32>
    %325 = math.absf %324 : vector<8x16xf32>
    %326 = arith.addf %323, %325 : vector<8x16xf32>
    %327 = arith.mulf %326, %292 : vector<8x16xf32>
    %c4 = arith.constant 4 : index
    %328 = memref.load %arg0[%c4] : memref<8xf32, #tpu.memory_space<smem>>
    %329 = vector.broadcast %328 : f32 to vector<8x16xf32>
    %330 = arith.mulf %327, %329 : vector<8x16xf32>
    %331 = arith.addf %270, %330 : vector<8x16xf32>
    %c32_130 = arith.constant 32 : index
    %c0_131 = arith.constant 0 : index
    %332 = vector.load %arg17[%c32_130, %c0_131] : memref<64x16xf32, #tpu.memory_space<vmem>>, vector<8x16xf32>
    tpu.vector_store %arg17[%c32_130, %c0_131], %318 {strides = array<i32>} : memref<64x16xf32, #tpu.memory_space<vmem>>, vector<8x16xf32>,
    %cst_132 = arith.constant dense<0.000000e+00> : vector<8x128xf32>
    %333 = tpu.matmul %318, %41, %cst_132 {dimension_numbers = #tpu.dot_dimension_numbers<[1], [0], [0], [1], [0, 0, 1, 1], [], []>} : vector<8x16xf32>, vector<16x128xf32>, vector<8x128xf32> -> vector<8x128xf32>
    %334 = arith.addf %333, %296 : vector<8x128xf32>
    %c32_133 = arith.constant 32 : index
    %c0_134 = arith.constant 0 : index
    %335 = vector.load %arg20[%c32_133, %c0_134] : memref<64x128xf32, #tpu.memory_space<vmem>>, vector<8x128xf32>
    %336 = arith.addf %334, %335 : vector<8x128xf32>
    %337 = arith.negf %336 : vector<8x128xf32>
    %338 = math.exp %337 : vector<8x128xf32>
    %cst_135 = arith.constant 1.000000e+00 : f32
    %339 = vector.broadcast %cst_135 : f32 to vector<8x128xf32>
    %340 = arith.addf %339, %338 : vector<8x128xf32>
    %341 = arith.divf %339, %340 : vector<8x128xf32>
    %342 = math.tanh %336 : vector<8x128xf32>
    %343 = vector.extract_strided_slice %341 {offsets = [0, 0], sizes = [8, 32], strides = [1, 1]} : vector<8x128xf32> to vector<8x32xf32>
    %344 = vector.extract_strided_slice %341 {offsets = [0, 32], sizes = [8, 32], strides = [1, 1]} : vector<8x128xf32> to vector<8x32xf32>
    %345 = vector.extract_strided_slice %342 {offsets = [0, 64], sizes = [8, 32], strides = [1, 1]} : vector<8x128xf32> to vector<8x32xf32>
    %346 = vector.extract_strided_slice %341 {offsets = [0, 96], sizes = [8, 32], strides = [1, 1]} : vector<8x128xf32> to vector<8x32xf32>
    %347 = arith.mulf %344, %288 : vector<8x32xf32>
    %348 = arith.mulf %343, %345 : vector<8x32xf32>
    %349 = arith.addf %347, %348 : vector<8x32xf32>
    %350 = math.tanh %349 : vector<8x32xf32>
    %351 = arith.mulf %346, %350 : vector<8x32xf32>
    %c40 = arith.constant 40 : index
    %c0_136 = arith.constant 0 : index
    %352 = vector.load %arg1[%c40, %c0_136] : memref<64x16xf32, #tpu.memory_space<vmem>>, vector<8x16xf32>
    %c40_137 = arith.constant 40 : index
    %c0_138 = arith.constant 0 : index
    %353 = vector.load %arg2[%c40_137, %c0_138] : memref<64x16xf32, #tpu.memory_space<vmem>>, vector<8x16xf32>
    %c40_139 = arith.constant 40 : index
    %c0_140 = arith.constant 0 : index
    %354 = vector.load %arg19[%c40_139, %c0_140] : memref<64x32xf32, #tpu.memory_space<vmem>>, vector<8x32xf32>
    %355 = arith.mulf %351, %354 : vector<8x32xf32>
    %cst_141 = arith.constant dense<0.000000e+00> : vector<8x144xf32>
    %356 = tpu.matmul %355, %39, %cst_141 {dimension_numbers = #tpu.dot_dimension_numbers<[1], [0], [0], [1], [0, 0, 1, 1], [], []>} : vector<8x32xf32>, vector<32x144xf32>, vector<8x144xf32> -> vector<8x144xf32>
    %357 = vector.extract_strided_slice %356 {offsets = [0, 0], sizes = [8, 128], strides = [1, 1]} : vector<8x144xf32> to vector<8x128xf32>
    %358 = vector.extract_strided_slice %356 {offsets = [0, 128], sizes = [8, 16], strides = [1, 1]} : vector<8x144xf32> to vector<8x16xf32>
    %359 = vector.broadcast %42 : vector<1x16xf32> to vector<8x16xf32>
    %360 = arith.addf %358, %359 : vector<8x16xf32>
    %361 = arith.mulf %353, %352 : vector<8x16xf32>
    %cst_142 = arith.constant 1.000000e+00 : f32
    %362 = vector.broadcast %cst_142 : f32 to vector<8x16xf32>
    %363 = arith.subf %362, %353 : vector<8x16xf32>
    %364 = arith.mulf %363, %360 : vector<8x16xf32>
    %365 = arith.addf %361, %364 : vector<8x16xf32>
    %cst_143 = arith.constant dense<0.000000e+00> : vector<8x16xf32>
    %366 = tpu.matmul %365, %40, %cst_143 {dimension_numbers = #tpu.dot_dimension_numbers<[1], [0], [0], [1], [0, 0, 1, 1], [], []>} : vector<8x16xf32>, vector<16x16xf32>, vector<8x16xf32> -> vector<8x16xf32>
    %367 = vector.broadcast %43 : vector<1x16xf32> to vector<8x16xf32>
    %368 = arith.addf %366, %367 : vector<8x16xf32>
    %c40_144 = arith.constant 40 : index
    %c0_145 = arith.constant 0 : index
    %369 = vector.load %arg21[%c40_144, %c0_145] : memref<64x16xf32, #tpu.memory_space<vmem>>, vector<8x16xf32>
    %370 = arith.mulf %369, %368 : vector<8x16xf32>
    %cst_146 = arith.constant 1.000000e+00 : f32
    %371 = vector.broadcast %cst_146 : f32 to vector<8x16xf32>
    %372 = arith.subf %371, %369 : vector<8x16xf32>
    %373 = arith.mulf %372, %360 : vector<8x16xf32>
    %374 = arith.addf %370, %373 : vector<8x16xf32>
    %375 = arith.mulf %353, %352 : vector<8x16xf32>
    %cst_147 = arith.constant 1.000000e+00 : f32
    %376 = vector.broadcast %cst_147 : f32 to vector<8x16xf32>
    %377 = arith.subf %376, %353 : vector<8x16xf32>
    %378 = arith.mulf %377, %374 : vector<8x16xf32>
    %379 = arith.addf %375, %378 : vector<8x16xf32>
    %380 = arith.subf %352, %360 : vector<8x16xf32>
    %381 = math.absf %380 : vector<8x16xf32>
    %382 = arith.subf %352, %368 : vector<8x16xf32>
    %383 = math.absf %382 : vector<8x16xf32>
    %384 = arith.addf %381, %383 : vector<8x16xf32>
    %385 = arith.subf %352, %374 : vector<8x16xf32>
    %386 = math.absf %385 : vector<8x16xf32>
    %387 = arith.addf %384, %386 : vector<8x16xf32>
    %388 = arith.mulf %387, %353 : vector<8x16xf32>
    %c5 = arith.constant 5 : index
    %389 = memref.load %arg0[%c5] : memref<8xf32, #tpu.memory_space<smem>>
    %390 = vector.broadcast %389 : f32 to vector<8x16xf32>
    %391 = arith.mulf %388, %390 : vector<8x16xf32>
    %392 = arith.addf %331, %391 : vector<8x16xf32>
    %c40_148 = arith.constant 40 : index
    %c0_149 = arith.constant 0 : index
    %393 = vector.load %arg17[%c40_148, %c0_149] : memref<64x16xf32, #tpu.memory_space<vmem>>, vector<8x16xf32>
    tpu.vector_store %arg17[%c40_148, %c0_149], %379 {strides = array<i32>} : memref<64x16xf32, #tpu.memory_space<vmem>>, vector<8x16xf32>,
    %cst_150 = arith.constant dense<0.000000e+00> : vector<8x128xf32>
    %394 = tpu.matmul %379, %41, %cst_150 {dimension_numbers = #tpu.dot_dimension_numbers<[1], [0], [0], [1], [0, 0, 1, 1], [], []>} : vector<8x16xf32>, vector<16x128xf32>, vector<8x128xf32> -> vector<8x128xf32>
    %395 = arith.addf %394, %357 : vector<8x128xf32>
    %c40_151 = arith.constant 40 : index
    %c0_152 = arith.constant 0 : index
    %396 = vector.load %arg20[%c40_151, %c0_152] : memref<64x128xf32, #tpu.memory_space<vmem>>, vector<8x128xf32>
    %397 = arith.addf %395, %396 : vector<8x128xf32>
    %398 = arith.negf %397 : vector<8x128xf32>
    %399 = math.exp %398 : vector<8x128xf32>
    %cst_153 = arith.constant 1.000000e+00 : f32
    %400 = vector.broadcast %cst_153 : f32 to vector<8x128xf32>
    %401 = arith.addf %400, %399 : vector<8x128xf32>
    %402 = arith.divf %400, %401 : vector<8x128xf32>
    %403 = math.tanh %397 : vector<8x128xf32>
    %404 = vector.extract_strided_slice %402 {offsets = [0, 0], sizes = [8, 32], strides = [1, 1]} : vector<8x128xf32> to vector<8x32xf32>
    %405 = vector.extract_strided_slice %402 {offsets = [0, 32], sizes = [8, 32], strides = [1, 1]} : vector<8x128xf32> to vector<8x32xf32>
    %406 = vector.extract_strided_slice %403 {offsets = [0, 64], sizes = [8, 32], strides = [1, 1]} : vector<8x128xf32> to vector<8x32xf32>
    %407 = vector.extract_strided_slice %402 {offsets = [0, 96], sizes = [8, 32], strides = [1, 1]} : vector<8x128xf32> to vector<8x32xf32>
    %408 = arith.mulf %405, %349 : vector<8x32xf32>
    %409 = arith.mulf %404, %406 : vector<8x32xf32>
    %410 = arith.addf %408, %409 : vector<8x32xf32>
    %411 = math.tanh %410 : vector<8x32xf32>
    %412 = arith.mulf %407, %411 : vector<8x32xf32>
    %c48 = arith.constant 48 : index
    %c0_154 = arith.constant 0 : index
    %413 = vector.load %arg1[%c48, %c0_154] : memref<64x16xf32, #tpu.memory_space<vmem>>, vector<8x16xf32>
    %c48_155 = arith.constant 48 : index
    %c0_156 = arith.constant 0 : index
    %414 = vector.load %arg2[%c48_155, %c0_156] : memref<64x16xf32, #tpu.memory_space<vmem>>, vector<8x16xf32>
    %c48_157 = arith.constant 48 : index
    %c0_158 = arith.constant 0 : index
    %415 = vector.load %arg19[%c48_157, %c0_158] : memref<64x32xf32, #tpu.memory_space<vmem>>, vector<8x32xf32>
    %416 = arith.mulf %412, %415 : vector<8x32xf32>
    %cst_159 = arith.constant dense<0.000000e+00> : vector<8x144xf32>
    %417 = tpu.matmul %416, %39, %cst_159 {dimension_numbers = #tpu.dot_dimension_numbers<[1], [0], [0], [1], [0, 0, 1, 1], [], []>} : vector<8x32xf32>, vector<32x144xf32>, vector<8x144xf32> -> vector<8x144xf32>
    %418 = vector.extract_strided_slice %417 {offsets = [0, 0], sizes = [8, 128], strides = [1, 1]} : vector<8x144xf32> to vector<8x128xf32>
    %419 = vector.extract_strided_slice %417 {offsets = [0, 128], sizes = [8, 16], strides = [1, 1]} : vector<8x144xf32> to vector<8x16xf32>
    %420 = vector.broadcast %42 : vector<1x16xf32> to vector<8x16xf32>
    %421 = arith.addf %419, %420 : vector<8x16xf32>
    %422 = arith.mulf %414, %413 : vector<8x16xf32>
    %cst_160 = arith.constant 1.000000e+00 : f32
    %423 = vector.broadcast %cst_160 : f32 to vector<8x16xf32>
    %424 = arith.subf %423, %414 : vector<8x16xf32>
    %425 = arith.mulf %424, %421 : vector<8x16xf32>
    %426 = arith.addf %422, %425 : vector<8x16xf32>
    %cst_161 = arith.constant dense<0.000000e+00> : vector<8x16xf32>
    %427 = tpu.matmul %426, %40, %cst_161 {dimension_numbers = #tpu.dot_dimension_numbers<[1], [0], [0], [1], [0, 0, 1, 1], [], []>} : vector<8x16xf32>, vector<16x16xf32>, vector<8x16xf32> -> vector<8x16xf32>
    %428 = vector.broadcast %43 : vector<1x16xf32> to vector<8x16xf32>
    %429 = arith.addf %427, %428 : vector<8x16xf32>
    %c48_162 = arith.constant 48 : index
    %c0_163 = arith.constant 0 : index
    %430 = vector.load %arg21[%c48_162, %c0_163] : memref<64x16xf32, #tpu.memory_space<vmem>>, vector<8x16xf32>
    %431 = arith.mulf %430, %429 : vector<8x16xf32>
    %cst_164 = arith.constant 1.000000e+00 : f32
    %432 = vector.broadcast %cst_164 : f32 to vector<8x16xf32>
    %433 = arith.subf %432, %430 : vector<8x16xf32>
    %434 = arith.mulf %433, %421 : vector<8x16xf32>
    %435 = arith.addf %431, %434 : vector<8x16xf32>
    %436 = arith.mulf %414, %413 : vector<8x16xf32>
    %cst_165 = arith.constant 1.000000e+00 : f32
    %437 = vector.broadcast %cst_165 : f32 to vector<8x16xf32>
    %438 = arith.subf %437, %414 : vector<8x16xf32>
    %439 = arith.mulf %438, %435 : vector<8x16xf32>
    %440 = arith.addf %436, %439 : vector<8x16xf32>
    %441 = arith.subf %413, %421 : vector<8x16xf32>
    %442 = math.absf %441 : vector<8x16xf32>
    %443 = arith.subf %413, %429 : vector<8x16xf32>
    %444 = math.absf %443 : vector<8x16xf32>
    %445 = arith.addf %442, %444 : vector<8x16xf32>
    %446 = arith.subf %413, %435 : vector<8x16xf32>
    %447 = math.absf %446 : vector<8x16xf32>
    %448 = arith.addf %445, %447 : vector<8x16xf32>
    %449 = arith.mulf %448, %414 : vector<8x16xf32>
    %c6 = arith.constant 6 : index
    %450 = memref.load %arg0[%c6] : memref<8xf32, #tpu.memory_space<smem>>
    %451 = vector.broadcast %450 : f32 to vector<8x16xf32>
    %452 = arith.mulf %449, %451 : vector<8x16xf32>
    %453 = arith.addf %392, %452 : vector<8x16xf32>
    %c48_166 = arith.constant 48 : index
    %c0_167 = arith.constant 0 : index
    %454 = vector.load %arg17[%c48_166, %c0_167] : memref<64x16xf32, #tpu.memory_space<vmem>>, vector<8x16xf32>
    tpu.vector_store %arg17[%c48_166, %c0_167], %440 {strides = array<i32>} : memref<64x16xf32, #tpu.memory_space<vmem>>, vector<8x16xf32>,
    %cst_168 = arith.constant dense<0.000000e+00> : vector<8x128xf32>
    %455 = tpu.matmul %440, %41, %cst_168 {dimension_numbers = #tpu.dot_dimension_numbers<[1], [0], [0], [1], [0, 0, 1, 1], [], []>} : vector<8x16xf32>, vector<16x128xf32>, vector<8x128xf32> -> vector<8x128xf32>
    %456 = arith.addf %455, %418 : vector<8x128xf32>
    %c48_169 = arith.constant 48 : index
    %c0_170 = arith.constant 0 : index
    %457 = vector.load %arg20[%c48_169, %c0_170] : memref<64x128xf32, #tpu.memory_space<vmem>>, vector<8x128xf32>
    %458 = arith.addf %456, %457 : vector<8x128xf32>
    %459 = arith.negf %458 : vector<8x128xf32>
    %460 = math.exp %459 : vector<8x128xf32>
    %cst_171 = arith.constant 1.000000e+00 : f32
    %461 = vector.broadcast %cst_171 : f32 to vector<8x128xf32>
    %462 = arith.addf %461, %460 : vector<8x128xf32>
    %463 = arith.divf %461, %462 : vector<8x128xf32>
    %464 = math.tanh %458 : vector<8x128xf32>
    %465 = vector.extract_strided_slice %463 {offsets = [0, 0], sizes = [8, 32], strides = [1, 1]} : vector<8x128xf32> to vector<8x32xf32>
    %466 = vector.extract_strided_slice %463 {offsets = [0, 32], sizes = [8, 32], strides = [1, 1]} : vector<8x128xf32> to vector<8x32xf32>
    %467 = vector.extract_strided_slice %464 {offsets = [0, 64], sizes = [8, 32], strides = [1, 1]} : vector<8x128xf32> to vector<8x32xf32>
    %468 = vector.extract_strided_slice %463 {offsets = [0, 96], sizes = [8, 32], strides = [1, 1]} : vector<8x128xf32> to vector<8x32xf32>
    %469 = arith.mulf %466, %410 : vector<8x32xf32>
    %470 = arith.mulf %465, %467 : vector<8x32xf32>
    %471 = arith.addf %469, %470 : vector<8x32xf32>
    %472 = math.tanh %471 : vector<8x32xf32>
    %473 = arith.mulf %468, %472 : vector<8x32xf32>
    %c56 = arith.constant 56 : index
    %c0_172 = arith.constant 0 : index
    %474 = vector.load %arg1[%c56, %c0_172] : memref<64x16xf32, #tpu.memory_space<vmem>>, vector<8x16xf32>
    %c56_173 = arith.constant 56 : index
    %c0_174 = arith.constant 0 : index
    %475 = vector.load %arg2[%c56_173, %c0_174] : memref<64x16xf32, #tpu.memory_space<vmem>>, vector<8x16xf32>
    %c56_175 = arith.constant 56 : index
    %c0_176 = arith.constant 0 : index
    %476 = vector.load %arg19[%c56_175, %c0_176] : memref<64x32xf32, #tpu.memory_space<vmem>>, vector<8x32xf32>
    %477 = arith.mulf %473, %476 : vector<8x32xf32>
    %cst_177 = arith.constant dense<0.000000e+00> : vector<8x144xf32>
    %478 = tpu.matmul %477, %39, %cst_177 {dimension_numbers = #tpu.dot_dimension_numbers<[1], [0], [0], [1], [0, 0, 1, 1], [], []>} : vector<8x32xf32>, vector<32x144xf32>, vector<8x144xf32> -> vector<8x144xf32>
    %479 = vector.extract_strided_slice %478 {offsets = [0, 128], sizes = [8, 16], strides = [1, 1]} : vector<8x144xf32> to vector<8x16xf32>
    %480 = vector.broadcast %42 : vector<1x16xf32> to vector<8x16xf32>
    %481 = arith.addf %479, %480 : vector<8x16xf32>
    %482 = arith.mulf %475, %474 : vector<8x16xf32>
    %cst_178 = arith.constant 1.000000e+00 : f32
    %483 = vector.broadcast %cst_178 : f32 to vector<8x16xf32>
    %484 = arith.subf %483, %475 : vector<8x16xf32>
    %485 = arith.mulf %484, %481 : vector<8x16xf32>
    %486 = arith.addf %482, %485 : vector<8x16xf32>
    %cst_179 = arith.constant dense<0.000000e+00> : vector<8x16xf32>
    %487 = tpu.matmul %486, %40, %cst_179 {dimension_numbers = #tpu.dot_dimension_numbers<[1], [0], [0], [1], [0, 0, 1, 1], [], []>} : vector<8x16xf32>, vector<16x16xf32>, vector<8x16xf32> -> vector<8x16xf32>
    %488 = vector.broadcast %43 : vector<1x16xf32> to vector<8x16xf32>
    %489 = arith.addf %487, %488 : vector<8x16xf32>
    %c56_180 = arith.constant 56 : index
    %c0_181 = arith.constant 0 : index
    %490 = vector.load %arg21[%c56_180, %c0_181] : memref<64x16xf32, #tpu.memory_space<vmem>>, vector<8x16xf32>
    %491 = arith.mulf %490, %489 : vector<8x16xf32>
    %cst_182 = arith.constant 1.000000e+00 : f32
    %492 = vector.broadcast %cst_182 : f32 to vector<8x16xf32>
    %493 = arith.subf %492, %490 : vector<8x16xf32>
    %494 = arith.mulf %493, %481 : vector<8x16xf32>
    %495 = arith.addf %491, %494 : vector<8x16xf32>
    %496 = arith.mulf %475, %474 : vector<8x16xf32>
    %cst_183 = arith.constant 1.000000e+00 : f32
    %497 = vector.broadcast %cst_183 : f32 to vector<8x16xf32>
    %498 = arith.subf %497, %475 : vector<8x16xf32>
    %499 = arith.mulf %498, %495 : vector<8x16xf32>
    %500 = arith.addf %496, %499 : vector<8x16xf32>
    %501 = arith.subf %474, %481 : vector<8x16xf32>
    %502 = math.absf %501 : vector<8x16xf32>
    %503 = arith.subf %474, %489 : vector<8x16xf32>
    %504 = math.absf %503 : vector<8x16xf32>
    %505 = arith.addf %502, %504 : vector<8x16xf32>
    %506 = arith.subf %474, %495 : vector<8x16xf32>
    %507 = math.absf %506 : vector<8x16xf32>
    %508 = arith.addf %505, %507 : vector<8x16xf32>
    %509 = arith.mulf %508, %475 : vector<8x16xf32>
    %c7 = arith.constant 7 : index
    %510 = memref.load %arg0[%c7] : memref<8xf32, #tpu.memory_space<smem>>
    %511 = vector.broadcast %510 : f32 to vector<8x16xf32>
    %512 = arith.mulf %509, %511 : vector<8x16xf32>
    %513 = arith.addf %453, %512 : vector<8x16xf32>
    %c56_184 = arith.constant 56 : index
    %c0_185 = arith.constant 0 : index
    %514 = vector.load %arg17[%c56_184, %c0_185] : memref<64x16xf32, #tpu.memory_space<vmem>>, vector<8x16xf32>
    tpu.vector_store %arg17[%c56_184, %c0_185], %500 {strides = array<i32>} : memref<64x16xf32, #tpu.memory_space<vmem>>, vector<8x16xf32>,
    %515 = vector.shape_cast %513 : vector<8x16xf32> to vector<1x8x16xf32>
    %cst_186 = arith.constant dense<0.000000e+00> : vector<1xf32>
    %516 = vector.multi_reduction <add>, %515, %cst_186 [1, 2] : vector<1x8x16xf32> to vector<1xf32>
    %517 = vector.shape_cast %516 : vector<1xf32> to vector<1x1x1xf32>
    %518 = vector.extract %517[0, 0, 0] : f32 from vector<1x1x1xf32>
    %cst_187 = arith.constant 8.000000e+00 : f32
    %519 = arith.divf %518, %cst_187 : f32
    %c0_188 = arith.constant 0 : index
    %520 = memref.load %arg18[%c0_188] : memref<1xf32, #tpu.memory_space<smem>>
    memref.store %519, %arg18[%c0_188] : memref<1xf32, #tpu.memory_space<smem>>
    return
  }
}

</mosaic_0001>

<bundles_post_ra>
// kernel: tpu_custom_call.1
= control target key start
LH: loop header
LB: loop body
LE: loop exit
PB: predicated region body
PF: predicated region fallthrough
CT: control target
= control target key end

     0   :  { %s4038_s0 = inlined_call_operand.vmem [shape: f32[8], index: 0, kind: input, shape index: {}]   ;;  %s4039_s1 = inlined_call_operand.vmem [shape: f32[64,16], index: 1, kind: input, shape index: {}]   ;;  %s4040_s2 = inlined_call_operand.vmem [shape: f32[64,16], index: 2, kind: input, shape index: {}]   ;;  %s4041_s3 = inlined_call_operand.vmem [shape: f32[64,16], index: 3, kind: input, shape index: {}]   ;;  %s4042_s4 = inlined_call_operand.vmem [shape: f32[16,32], index: 4, kind: input, shape index: {}]   ;;  %s4043_s5 = inlined_call_operand.vmem [shape: f32[32,144], index: 5, kind: input, shape index: {}]   ;;  %s4044_s6 = inlined_call_operand.vmem [shape: f32[16,16], index: 6, kind: input, shape index: {}]   ;;  %s4045_s7 = inlined_call_operand.vmem [shape: f32[16,16], index: 7, kind: input, shape index: {}]   ;;  %s4046_s8 = inlined_call_operand.vmem [shape: f32[16,144], index: 8, kind: input, shape index: {}]   ;;  %s4047_s9 = inlined_call_operand.vmem [shape: f32[16,128], index: 9, kind: input, shape index: {}]   ;;  %s4048_s10 = inlined_call_operand.vmem [shape: f32[1,32], index: 10, kind: input, shape index: {}]   ;;  %s4049_s11 = inlined_call_operand.vmem [shape: f32[1,16], index: 11, kind: input, shape index: {}]   ;;  %s4050_s12 = inlined_call_operand.vmem [shape: f32[1,16], index: 12, kind: input, shape index: {}]   ;;  %s4051_s13 = inlined_call_operand.vmem [shape: f32[1,16], index: 13, kind: input, shape index: {}]   ;;  %s4052_s14 = inlined_call_operand.vmem [shape: f32[1,16], index: 14, kind: input, shape index: {}]   ;;  %s4053_s15 = inlined_call_operand.vmem [shape: f32[1,16], index: 15, kind: input, shape index: {}]   ;;  %s4054_s16 = inlined_call_operand.vmem [shape: f32[1,128], index: 16, kind: input, shape index: {}]   ;;  %s4055_s17 = inlined_call_operand.vmem [shape: f32[64,16], index: 17, kind: output, shape index: {0}]   ;;  %s4056_s18 = inlined_call_operand.hbm [shape: f32[1], index: 18, kind: output, shape index: {1}]  }
   0x1   :  { %4059 = sst [smem:[#allocation11_spill]] %s4038_s0 }
   0x2   :  { %4060 = sst [smem:[#allocation12_spill]] %s4039_s1 }
   0x3   :  { %4061 = sst [smem:[#allocation13_spill]] %s4040_s2 }
   0x4   :  { %24 = vsyncpa [#allocation7], 0 }
   0x5   :  { %25 = vsyncpa [#allocation6], 0  ;;  %s4062_s29 = sld [smem:[#allocation11_spill]] }
   0xb   :  { %s32_s30 = sshll.u32 %s4062_s29, 4  ;;  %s33_s30 = int_to_ptr.vmem [resolvable:$true] %s32_s30 }
   0xc   :  { %s3350_s0 = scalar_lea.vmem %s33_s30, 16  ;;  %p3355_p1 = scmp.lt.s32.totalorder %s33_s30, %s33_s30 }
   0xd   :  { %p3351_p0 = scmp.ne.s32.totalorder %s33_s30, %s3350_s0  ;;  %p3356_p2 = scmp.lt.s32.totalorder %s3350_s0, %s3350_s0 }
   0xf   :  { %p3357_p3 = por %p3356_p2, %p3355_p1 }
  0x11   :  { %p3358_p4 = pnand %p3357_p3, %p3351_p0 }
  0x13   :  { %3361 = shalt.err (!%p3358_p4)
}
  0x14   :  { %s3376_s19 = smov [#allocation5]  }
  0x15   :  { %35 = dma.vmem_to_smem %s33_s30, 16, %s3376_s19, [#allocation7]  }
  0x16   :  { %3372 = dma.done.wait [#allocation7], 16  }
  0x17   :  { %3373 = vsyncadd [#allocation7], 4294967280 }
  0x18   :  { %71 = sfence }
  0x19   :  { %v88_v0 = vld [vmem:[%s4042_s4] sm:$0xff]  ;;  %v89_v1 = vld [vmem:[%s4042_s4 + $0x8] sm:$0xff]  ;;  %vm97_vm0 = vcmask 130048   ;;  %v3377_v4 = vmov 0.0   ;;  %v333_v6 = vld [vmem:[%s4046_s8 + $0x18] sm:$0xff]  ;;  %vm259_vm1 = vcmask 261120  }
  0x1a   :  { %v72_v2 = vld [vmem:[%s4041_s3] sm:$0xff]  ;;  %v3127_v3 = vpack.c.bf16 %v89_v1, %v88_v0  ;;  %422 = vmatprep.mubr.f32.mxu1 %v3377_v4  ;;  %v331_v5 = vld [vmem:[%s4046_s8 + $0x8] sm:$0xff]  ;;  %v332_v9 = vld [vmem:[%s4046_s8 + $0x10] sm:$0xff]  ;;  %vm3379_vm2 = vmmov 0   ;;  %s4064_s20 = sld [smem:[#allocation12_spill]]  ;;  %s3380_s27 = smov 64  }
  0x1b   :  { %2994 = vmatprep.mubr.msk.f32.mxu0 %vm97_vm0, %v72_v2  ;;  %v330_v7 = vld [vmem:[%s4046_s8] sm:$0xff]  ;;  %v3131_v8 = vpack.c.bf16 %v333_v6, %v331_v5  ;;  %v73_v11 = vld [vmem:[%s4041_s3 + $0x8] sm:$0xff]  ;;  %s4063_s8 = sld [smem:[#allocation13_spill]]  ;;  %v74_v28 = vld [vmem:[%s4041_s3 + $0x10] sm:$0xff]  ;;  %s3382_s4 = smov 96  }
  0x1c   :  { %3128 = vmatprep.subr.bf16.mxu0 %v3127_v3  ;;  %v494_v10 = vld [vmem:[%s4045_s7] sm:$0xff]  ;;  %v3133_v12 = vpack.c.bf16 %v332_v9, %v330_v7  ;;  %v495_v13 = vld [vmem:[%s4045_s7 + $0x8] sm:$0xff]  ;;  %v75_v30 = vld [vmem:[%s4041_s3 + $0x18] sm:$0xff]  ;;  %s2894_s28 = sld [smem:[#allocation5 + $0x1]]  ;;  %s2904_s22 = sld [smem:[#allocation5 + $0x3]] }
  0x1d   :  { %3130 = vmatpush3.bf16.msra.mxu0 %v3127_v3  ;;  %3132 = vmatprep.subr.bf16.mxu1 %v3131_v8  ;;  %v3135_v14 = vpack.c.bf16 %v495_v13, %v494_v10  ;;  %v2866_v16 = vld [vmem:[%s4049_s11] ss:$0 sm:$0xff]  ;;  %v77_v37 = vld [vmem:[%s4041_s3 + $0x28] sm:$0xff]  ;;  %v78_v46 = vld [vmem:[%s4041_s3 + $0x30] sm:$0xff]  ;;  %s2914_s30 = sld [smem:[#allocation5 + $0x5]]  ;;  %s2919_s21 = sld [smem:[#allocation5 + $0x6]] }
  0x1e   :  { %3134 = vmatpush1.bf16.msra.mxu1 %v3133_v12  ;;  %v275_v17 = vmul.f32 %v2866_v16, %v72_v2  ;;  %v2867_v18 = vld [vmem:[%s4050_s12] ss:$0 sm:$0xff]  ;;  %v276_v19 = vmul.f32 %v2866_v16, %v73_v11  ;;  %v277_v29 = vmul.f32 %v2866_v16, %v74_v28  ;;  %v278_v31 = vmul.f32 %v2866_v16, %v75_v30  ;;  %v79_v50 = vld [vmem:[%s4041_s3 + $0x38] sm:$0xff]  ;;  %s846_s12 = sld [smem:[#allocation5]] }
  0x1f   :  { %3136 = vmatprep.subr.bf16.mxu0 %v3135_v14  ;;  %v76_v34 = vld [vmem:[%s4041_s3 + $0x20] sm:$0xff]  ;;  %v280_v40 = vmul.f32 %v2866_v16, %v77_v37  ;;  %v281_v49 = vmul.f32 %v2866_v16, %v78_v46  ;;  %v282_v54 = vmul.f32 %v2866_v16, %v79_v50  ;;  %v651_v12 = vld [vmem:[%s4043_s5 + $0x18] sm:$0xff] }
  0x20   :  { %2995 = vmatmul.mubr.msk.f32.vlgmr.msra.gmra.mrb[0].mxu0 %vm97_vm0, %v73_v11  ;;  %v290_v20 = vadd.f32 %v2867_v18, %v275_v17  ;;  %v291_v21 = vadd.f32 %v2867_v18, %v276_v19  ;;  %v292_v32 = vadd.f32 %v2867_v18, %v277_v29  ;;  %v293_v33 = vadd.f32 %v2867_v18, %v278_v31  ;;  %v649_v11 = vld [vmem:[%s4043_s5 + $0x8] sm:$0xff]  ;;  %v650_v17 = vld [vmem:[%s4043_s5 + $0x10] sm:$0xff] }
  0x21   :  { %v3517_v15 = vld [vmem:[%s4063_s8] sm:$0xff]  ;;  %3138 = vmatpush3.bf16.msra.mxu0 %v3135_v14  ;;  %2997 = vmatprep.mubr.msk.f32.mxu0 %vm97_vm0, %v74_v28  ;;  %v279_v36 = vmul.f32 %v2866_v16, %v76_v34  ;;  %v3547_v39 = vld [vmem:[%s4063_s8 + $0x8] sm:$0xff]  ;;  %v295_v45 = vadd.f32 %v2867_v18, %v280_v40  ;;  %v3563_v53 = vld [vmem:[%s4063_s8 + $0x10] sm:$0xff]  ;;  %v296_v57 = vadd.f32 %v2867_v18, %v281_v49  ;;  %v3378_v29 = vmov 0.0|0.0  }
  0x22   :  { %2868 = vmatmul.mubr.msk.f32.vlgmr.msra.gmra.mrb[0].mxu1 %vm97_vm0, %v3517_v15  ;;  %v298_v22 = vmax.f32 %v290_v20, 0.0  ;;  %v299_v23 = vmax.f32 %v291_v21, 0.0  ;;  %v300_v35 = vmax.f32 %v292_v32, 0.0  ;;  %v301_v38 = vmax.f32 %v293_v33, 0.0  ;;  %v3573_v0 = vld [vmem:[%s4063_s8 + $0x18] sm:$0xff]  ;;  %v3582_v6 = vld [vmem:[%s4063_s8 + $0x20] sm:$0xff]  ;;  %3147 = vmatprep.subr.bf16.mxu1 %v3378_v29 }
  0x23   :  { %428 = vmatprep.mubr.f32.mxu1 %v3377_v4  ;;  %v294_v42 = vadd.f32 %v2867_v18, %v279_v36  ;;  %v303_v52 = vmax.f32 %v295_v45, 0.0  ;;  %v297_v59 = vadd.f32 %v2867_v18, %v282_v54  ;;  %v304_v61 = vmax.f32 %v296_v57, 0.0  ;;  %v85_v9 = vld [vmem:[%s4063_s8 + $0x28] sm:$0xff]  ;;  %v648_v16 = vld [vmem:[%s4043_s5] sm:$0xff]  ;;  %v86_v18 = vld [vmem:[%s4063_s8 + $0x30] sm:$0xff] }
  0x24   :  { %v306_v24 = vsub.f32 0.0, %v298_v22  ;;  %v307_v25 = vsub.f32 0.0, %v299_v23  ;;  %2998 = vmatmul.mubr.msk.f32.gmra.mrb[2].mxu0 %vm97_vm0, %v75_v30  ;;  %v308_v41 = vsub.f32 0.0, %v300_v35  ;;  %v309_v44 = vsub.f32 0.0, %v301_v38  ;;  %v653_v20 = vld [vmem:[%s4043_s5 + $0x28] sm:$0xff]  ;;  %v655_v21 = vld [vmem:[%s4043_s5 + $0x38] sm:$0xff] }
  0x25   :  { %3000 = vmatprep.mubr.msk.f32.mxu0 %vm97_vm0, %v76_v34  ;;  %v302_v48 = vmax.f32 %v294_v42, 0.0  ;;  %v311_v58 = vsub.f32 0.0, %v303_v52  ;;  %v305_v63 = vmax.f32 %v297_v59, 0.0  ;;  %v312_v1 = vsub.f32 0.0, %v304_v61  ;;  %v652_v22 = vld [vmem:[%s4043_s5 + $0x20] sm:$0xff]  ;;  %v657_v31 = vld [vmem:[%s4044_s6 + $0x8] sm:$0xff] }
  0x26   :  { %v314_v26 = vmul.f32 1.442695, %v306_v24  ;;  %v316_v27 = vmul.f32 1.442695, %v307_v25  ;;  %2869 = vmatmul.mubr.msk.f32.gmra.mrb[2].mxu1 %vm97_vm0, %v3547_v39  ;;  %v318_v47 = vmul.f32 1.442695, %v308_v41  ;;  %v3600_v14 = vpack.c.bf16 %v651_v12, %v649_v11 }
  0x27   :  { %434 = vmatprep.mubr.f32.mxu1 %v3377_v4  ;;  %v320_v51 = vmul.f32 1.442695, %v309_v44  ;;  %v310_v56 = vsub.f32 0.0, %v302_v48  ;;  %v324_v62 = vmul.f32 1.442695, %v311_v58  ;;  %v313_v2 = vsub.f32 0.0, %v305_v63 }
  0x28   :  { %3258 = vpow2.f32 %v314_v26  ;;  %3001 = vmatmul.mubr.msk.f32.gmra.mrb[4].mxu0 %vm97_vm0, %v77_v37  ;;  %v326_v3 = vmul.f32 1.442695, %v312_v1  ;;  %v3612_v19 = vpack.c.bf16 %v650_v17, %v648_v16  ;;  %3140 = vmatprep.subr.bf16.mxu0 %v3600_v14  ;;  %v3626_v23 = vpack.c.bf16 %v655_v21, %v653_v20  ;;  %v654_v24 = vld [vmem:[%s4043_s5 + $0x30] sm:$0xff]  ;;  %v87_v25 = vld [vmem:[%s4063_s8 + $0x38] sm:$0xff]  ;;  %v656_v30 = vld [vmem:[%s4044_s6] sm:$0xff]  ;;  %s3362_s5 = scalar_lea.hbm %s4056_s18, 16 }
  0x29   :  { %3260 = vpow2.f32 %v316_v27  ;;  %3003 = vmatprep.mubr.msk.f32.mxu0 %vm97_vm0, %v78_v46  ;;  %v322_v60 = vmul.f32 1.442695, %v310_v56  ;;  %v328_v5 = vmul.f32 1.442695, %v313_v2  ;;  %v3636_v27 = vpack.c.bf16 %v654_v24, %v652_v22  ;;  %v2857_v33 = vld [vmem:[%s4048_s10] ss:$0 sm:$0xff]  ;;  %p3363_p5 = scmp.ne.s32.totalorder %s4056_s18, %s3362_s5  ;;  %p3366_p6 = scmp.lt.u32.totalorder %s3362_s5, %s4056_s18 }
  0x2a   :  { %3262 = vpow2.f32 %v318_v47  ;;  %2870 = vmatmul.mubr.msk.f32.gmra.mrb[4].mxu1 %vm97_vm0, %v3563_v53  ;;  %v3652_v32 = vpack.c.bf16 %v657_v31, %v656_v30 }
  0x2b   :  { %3264 = vpow2.f32 %v320_v51  ;;  %440 = vmatprep.mubr.f32.mxu1 %v3377_v4  ;;  %p3368_p7 = pnand %p3366_p6, %p3363_p5 }
  0x2c   :  { %3004 = vmatmul.mubr.msk.f32.gmra.mrb[6].mxu0 %vm97_vm0, %v79_v50  ;;  %3266 = vpow2.f32 %v322_v60  ;;  %3149 = vmatpush3.bf16.msra.mxu1 %v3652_v32 }
  0x2d   :  { %3268 = vpow2.f32 %v324_v62  ;;  %3154 = vmatprep.subr.bf16.mxu1 %v3600_v14 }
  0x2e   :  { %2871 = vmatmul.mubr.msk.f32.gmra.mrb[6].mxu1 %vm97_vm0, %v3573_v0  ;;  %3270 = vpow2.f32 %v326_v3 }
  0x2f   :  { %446 = vmatprep.mubr.f32.mxu1 %v3377_v4  ;;  %3272 = vpow2.f32 %v328_v5 }
  0x32   :  { %v3259_v43 = vpop.eup %3258  ;;  %2872 = vmatmul.mubr.msk.f32.gmra.mrb[8].mxu1 %vm97_vm0, %v3582_v6 }
  0x33   :  { %v3261_v55 = vpop.eup %3260  ;;  %3010 = vmatprep.mubr.msk.f32.mxu0 %vm97_vm0, %v3259_v43  ;;  %452 = vmatprep.mubr.f32.mxu1 %v3377_v4 }
  0x34   :  { %3011 = vmatmul.mubr.msk.f32.vlgmr.msra.gmra.mrb[8].mxu0 %vm97_vm0, %v3261_v55  ;;  %v3263_v7 = vpop.eup %3262 }
  0x35   :  { %v3265_v8 = vpop.eup %3264  ;;  %3013 = vmatprep.mubr.msk.f32.mxu0 %vm97_vm0, %v3263_v7  ;;  %3142 = vmatpush1.bf16.msra.mxu0 %v3612_v19 }
  0x36   :  { %2873 = vmatmul.mubr.msk.f32.gmra.mrb[10].mxu1 %vm97_vm0, %v85_v9  ;;  %v3267_v10 = vpop.eup %3266  ;;  %3144 = vmatprep.subr.bf16.mxu0 %v3626_v23 }
  0x37   :  { %458 = vmatprep.mubr.f32.mxu1 %v3377_v4  ;;  %v3269_v13 = vpop.eup %3268 }
  0x38   :  { %3014 = vmatmul.mubr.msk.f32.gmra.mrb[10].mxu0 %vm97_vm0, %v3265_v8  ;;  %v3271_v26 = vpop.eup %3270 }
  0x39   :  { %3016 = vmatprep.mubr.msk.f32.mxu0 %vm97_vm0, %v3267_v10  ;;  %v3273_v28 = vpop.eup %3272  ;;  %3146 = vmatpush1.bf16.msra.mxu0 %v3636_v27 }
  0x3a   :  { %2874 = vmatmul.mubr.msk.f32.gmra.mrb[12].mxu1 %vm97_vm0, %v86_v18  ;;  %3150 = vmatprep.subr.bf16.mxu0 %v3378_v29 }
  0x3b   :  { %464 = vmatprep.mubr.f32.mxu1 %v3377_v4 }
  0x3c   :  { %3017 = vmatmul.mubr.msk.f32.gmra.mrb[12].mxu0 %vm97_vm0, %v3269_v13 }
  0x3d   :  { %3019 = vmatprep.mubr.msk.f32.mxu0 %vm97_vm0, %v3271_v26  ;;  %v2885_v26 = vld [vmem:[%s4053_s15] ss:$0 sm:$0xff]  ;;  %s2899_s15 = sld [smem:[#allocation5 + $0x2]] }
  0x3e   :  { %2875 = vmatmul.mubr.msk.f32.gmra.mrb[14].mxu1 %vm97_vm0, %v87_v25 }
  0x3f   :  { %3026 = vmatprep.mubr.msk.f32.mxu1 %vm3379_vm2, %v3377_v4 }
  0x40   :  { %3020 = vmatmul.mubr.msk.f32.gmra.mrb[14].mxu0 %vm97_vm0, %v3273_v28 }
  0x41   :  { %733 = vmatprep.mubr.f32.mxu0 %v3377_v4 }
  0xf3   :  { %v2996_v34 = vpop.f32.mrb[0].mxu0 }
  0xf4   :  { %v194_v35 = vadd.f32 %v2996_v34, %v2857_v33  ;;  %v188_v36 = vpop.f32.mrb[1].mxu0 }
  0xf5   :  { %v189_v37 = vadd.f32 %v2857_v33, %v188_v36  ;;  %v3659_v38 = vpop.f32.mrb[0].mxu1 }
  0xf6   :  { %v228_v40 = vmax.f32 %v194_v35, 0.0  ;;  %v426_v41 = vpop.f32.mrb[1].mxu1 }
  0xf7   :  { %v227_v42 = vmax.f32 %v189_v37, 0.0  ;;  %v2999_v51 = vpop.f32.mrb[2].mxu0 }
  0xf8   :  { %v236_v43 = vsub.f32 0.0, %v228_v40  ;;  %v204_v52 = vadd.f32 %v2999_v51, %v2857_v33  ;;  %v198_v54 = vpop.f32.mrb[3].mxu0 }
  0xf9   :  { %v235_v44 = vsub.f32 0.0, %v227_v42  ;;  %v199_v55 = vadd.f32 %v2857_v33, %v198_v54  ;;  %v3664_v62 = vpop.f32.mrb[2].mxu1 }
  0xfa   :  { %v245_v45 = vmul.f32 1.442695, %v236_v43  ;;  %v230_v56 = vmax.f32 %v204_v52, 0.0  ;;  %v432_v2 = vpop.f32.mrb[3].mxu1 }
  0xfb   :  { %v243_v46 = vmul.f32 1.442695, %v235_v44  ;;  %v229_v57 = vmax.f32 %v199_v55, 0.0  ;;  %v3002_v58 = vpop.f32.mrb[4].mxu0 }
  0xfc   :  { %3274 = vpow2.f32 %v245_v45  ;;  %v238_v59 = vsub.f32 0.0, %v230_v56  ;;  %v214_v60 = vadd.f32 %v3002_v58, %v2857_v33  ;;  %v208_v61 = vpop.f32.mrb[5].mxu0 }
  0xfd   :  { %3276 = vpow2.f32 %v243_v46  ;;  %v237_v63 = vsub.f32 0.0, %v229_v57  ;;  %v209_v1 = vadd.f32 %v2857_v33, %v208_v61  ;;  %v3666_v13 = vpop.f32.mrb[4].mxu1 }
  0xfe   :  { %v249_v3 = vmul.f32 1.442695, %v238_v59  ;;  %v232_v5 = vmax.f32 %v214_v60, 0.0  ;;  %v438_v18 = vpop.f32.mrb[5].mxu1 }
  0xff   :  { %v247_v7 = vmul.f32 1.442695, %v237_v63  ;;  %v231_v8 = vmax.f32 %v209_v1, 0.0  ;;  %v3005_v9 = vpop.f32.mrb[6].mxu0 }
 0x100   :  { %3278 = vpow2.f32 %v249_v3  ;;  %v240_v10 = vsub.f32 0.0, %v232_v5  ;;  %v224_v11 = vadd.f32 %v3005_v9, %v2857_v33  ;;  %v218_v12 = vpop.f32.mrb[7].mxu0 }
 0x101   :  { %3280 = vpow2.f32 %v247_v7  ;;  %v239_v16 = vsub.f32 0.0, %v231_v8  ;;  %v219_v17 = vadd.f32 %v2857_v33, %v218_v12  ;;  %v3671_v34 = vpop.f32.mrb[6].mxu1 }
 0x102   :  { %v253_v20 = vmul.f32 1.442695, %v240_v10  ;;  %v234_v21 = vmax.f32 %v224_v11, 0.0  ;;  %v444_v33 = vpop.f32.mrb[7].mxu1 }
 0x103   :  { %v251_v22 = vmul.f32 1.442695, %v239_v16  ;;  %v233_v24 = vmax.f32 %v219_v17, 0.0 }
 0x104   :  { %3282 = vpow2.f32 %v253_v20  ;;  %v242_v28 = vsub.f32 0.0, %v234_v21  ;;  %v3700_v20 = vld [vmem:[%s4051_s13] ss:$0 sm:$0xff] }
 0x105   :  { %3284 = vpow2.f32 %v251_v22  ;;  %v241_v35 = vsub.f32 0.0, %v233_v24  ;;  %v3674_v44 = vpop.f32.mrb[8].mxu1  ;;  %v662_v21 = vld [vmem:[%s4064_s20] sm:$0xff]  ;;  %v748_v24 = vsub.f32 1.0, %v3517_v15 }
 0x106   :  { %v3275_v47 = vpop.eup %3274  ;;  %v257_v37 = vmul.f32 1.442695, %v242_v28  ;;  %v450_v45 = vpop.f32.mrb[9].mxu1  ;;  %v747_v28 = vmul.f32 %v662_v21, %v3517_v15 }
 0x107   :  { %v3277_v48 = vpop.eup %3276  ;;  %261 = vst.msk [vmem:[#allocation2 + $0x8] sm:$0xff] %vm259_vm1, %v3275_v47  ;;  %v3012_v25 = vpop.f32.mrb[8].mxu0  ;;  %v255_v42 = vmul.f32 1.442695, %v241_v35  ;;  %v658_v35 = vld [vmem:[%s4047_s9] sm:$0xff] }
 0x108   :  { %260 = vst.msk [vmem:[#allocation2] sm:$0xff] %vm259_vm1, %v3277_v48  ;;  %v592_v30 = vadd.f32 %v3012_v25, %v432_v2  ;;  %v586_v31 = vpop.f32.mrb[9].mxu0  ;;  %3286 = vpow2.f32 %v257_v37  ;;  %v3727_v37 = vld [vmem:[%s4052_s14] ss:$0 sm:$0xff] }
 0x109   :  { %v587_v36 = vadd.f32 %v586_v31, %v426_v41  ;;  %3288 = vpow2.f32 %v255_v42  ;;  %v3679_v48 = vpop.f32.mrb[10].mxu1 }
 0x10a   :  { %v633_v40 = vadd.f32 %v2885_v26, %v592_v30  ;;  %v3279_v46 = vpop.eup %3278  ;;  %v456_v51 = vpop.f32.mrb[11].mxu1 }
 0x10b   :  { %v632_v43 = vadd.f32 %v2885_v26, %v587_v36  ;;  %v3281_v47 = vpop.eup %3280  ;;  %263 = vst.msk [vmem:[#allocation2 + $0x18] sm:$0xff] %vm259_vm1, %v3279_v46  ;;  %v3015_v41 = vpop.f32.mrb[10].mxu0  ;;  %v659_v36 = vld [vmem:[%s4047_s9 + $0x8] sm:$0xff]  ;;  %s2909_s9 = sld [smem:[#allocation5 + $0x4]] }
 0x10c   :  { %641 = vst.msk [vmem:[#allocation4 + $0x8] sm:$0xff] %vm97_vm0, %v633_v40 }
 0x10d   :  { %640 = vst.msk [vmem:[#allocation4] sm:$0xff] %vm97_vm0, %v632_v43  ;;  %v3683_v59 = vpop.f32.mrb[12].mxu1 }
 0x10e   :  { %262 = vst.msk [vmem:[#allocation2 + $0x10] sm:$0xff] %vm259_vm1, %v3281_v47  ;;  %v3283_v52 = vpop.eup %3282  ;;  %v462_v63 = vpop.f32.mrb[13].mxu1 }
 0x10f   :  { %v664_v49 = vld [vmem:[#allocation2] sm:$0xff]  ;;  %v3285_v55 = vpop.eup %3284  ;;  %265 = vst.msk [vmem:[#allocation2 + $0x28] sm:$0xff] %vm259_vm1, %v3283_v52 }
 0x110   :  { %v665_v50 = vmul.f32 0.0, %v664_v49  ;;  %v602_v49 = vadd.f32 %v3015_v41, %v444_v33  ;;  %264 = vst.msk [vmem:[#allocation2 + $0x20] sm:$0xff] %vm259_vm1, %v3285_v55  ;;  %v3720_v33 = vpack.c.bf16 %v659_v36, %v658_v35  ;;  %v950_v35 = vld [vmem:[%s4064_s20 + $0x8] sm:$0xff] }
 0x111   :  { %v466_v8 = vpop.f32.mrb[14].mxu1 }
 0x112   :  { %2886 = vmatmul.mubr.msk.f32.vlgmr.msra.gmra.mrb[16].mxu0 %vm259_vm1, %v665_v50  ;;  %v596_v50 = vpop.f32.mrb[11].mxu0  ;;  %v635_v56 = vadd.f32 %v2885_v26, %v602_v49  ;;  %v3287_v1 = vpop.eup %3286 }
 0x113   :  { %v597_v54 = vadd.f32 %v596_v50, %v438_v18  ;;  %v3018_v58 = vpop.f32.mrb[12].mxu0  ;;  %v3289_v3 = vpop.eup %3288  ;;  %267 = vst.msk [vmem:[#allocation2 + $0x38] sm:$0xff] %vm259_vm1, %v3287_v1  ;;  %3033 = vmatprep.mubr.msk.f32.mxu0 %vm3379_vm2, %v3377_v4  ;;  %3152 = vmatpush3.bf16.msra.mxu0 %v3720_v33 }
 0x114   :  { %643 = vst.msk [vmem:[#allocation4 + $0x18] sm:$0xff] %vm97_vm0, %v635_v56  ;;  %v612_v60 = vadd.f32 %v3018_v58, %v456_v51  ;;  %v606_v61 = vpop.f32.mrb[13].mxu0  ;;  %v468_v10 = vpop.f32.mrb[15].mxu1  ;;  %3161 = vmatprep.subr.bf16.mxu0 %v3378_v29  ;;  %v830_v40 = vld [vmem:[#allocation4] sm:$0xff] }
 0x115   :  { %v634_v57 = vadd.f32 %v2885_v26, %v597_v54  ;;  %v607_v2 = vadd.f32 %v606_v61, %v450_v45  ;;  %266 = vst.msk [vmem:[#allocation2 + $0x30] sm:$0xff] %vm259_vm1, %v3289_v3  ;;  %v3021_v9 = vpop.f32.mrb[14].mxu0  ;;  %v832_v46 = vsub.f32 1.0, %v830_v40 }
 0x116   :  { %v637_v5 = vadd.f32 %v2885_v26, %v612_v60  ;;  %v616_v11 = vpop.f32.mrb[15].mxu0  ;;  %v622_v12 = vadd.f32 %v3021_v9, %v468_v10 }
 0x117   :  { %642 = vst.msk [vmem:[#allocation4 + $0x10] sm:$0xff] %vm97_vm0, %v634_v57  ;;  %v636_v7 = vadd.f32 %v2885_v26, %v607_v2  ;;  %v617_v16 = vadd.f32 %v616_v11, %v462_v63  ;;  %v3744_v63 = vld [vmem:[%s4054_s16] ss:$0 sm:$0xff]  ;;  %s3381_s16 = smov 32  }
 0x118   :  { %645 = vst.msk [vmem:[#allocation4 + $0x28] sm:$0xff] %vm97_vm0, %v637_v5  ;;  %v639_v17 = vadd.f32 %v2885_v26, %v622_v12  ;;  %v478_v2 = vadd.f32 %v3744_v63, %v3659_v38 }
 0x119   :  { %644 = vst.msk [vmem:[#allocation4 + $0x20] sm:$0xff] %vm97_vm0, %v636_v7  ;;  %v638_v18 = vadd.f32 %v2885_v26, %v617_v16 }
 0x11a   :  { %647 = vst.msk [vmem:[#allocation4 + $0x38] sm:$0xff] %vm97_vm0, %v639_v17 }
 0x11b   :  { %646 = vst.msk [vmem:[#allocation4 + $0x30] sm:$0xff] %vm97_vm0, %v638_v18 }
 0x1e5   :  { %v735_v22 = vpop.f32.mrb[16].mxu0 }
 0x1e6   :  { %v737_v25 = vpop.f32.mrb[17].mxu0 }
 0x1e7   :  { %v746_v26 = vadd.f32 %v3700_v20, %v737_v25 }
 0x1e9   :  { %v749_v30 = vmul.f32 %v748_v24, %v746_v26  ;;  %v837_v43 = vsub.f32 %v662_v21, %v746_v26  ;;  %v833_v49 = vmul.f32 %v832_v46, %v746_v26 }
 0x1eb   :  { %v750_v31 = vadd.f32 %v749_v30, %v747_v28  ;;  %v838_v51 = vand.u32 2147483647, %v837_v43 }
 0x1ed   :  { %3027 = vmatmul.mubr.msk.f32.vlgmr.msra.gmra.mrb[16].mxu1 %vm97_vm0, %v750_v31 }
 0x1ee   :  { %3156 = vmatpush1.bf16.msra.mxu1 %v3612_v19  ;;  %1027 = vmatprep.mubr.f32.mxu1 %v3377_v4 }
 0x1ef   :  { %3158 = vmatprep.subr.bf16.mxu1 %v3626_v23 }
 0x1f2   :  { %3160 = vmatpush1.bf16.msra.mxu1 %v3636_v27 }
 0x1f3   :  { %3168 = vmatprep.subr.bf16.mxu1 %v3600_v14 }
 0x2c0   :  { %v826_v42 = vpop.f32.mrb[16].mxu1 }
 0x2c1   :  { %v827_v45 = vadd.f32 %v3727_v37, %v826_v42  ;;  %v3028_v47 = vpop.f32.mrb[17].mxu1 }
 0x2c3   :  { %v831_v41 = vmul.f32 %v830_v40, %v827_v45  ;;  %v839_v50 = vsub.f32 %v662_v21, %v827_v45  ;;  %v1036_v40 = vsub.f32 1.0, %v3547_v39  ;;  %v1035_v45 = vmul.f32 %v950_v35, %v3547_v39 }
 0x2c5   :  { %v834_v52 = vadd.f32 %v833_v49, %v831_v41  ;;  %v840_v54 = vand.u32 2147483647, %v839_v50  ;;  %v1112_v41 = vld [vmem:[#allocation4 + $0x8] sm:$0xff] }
 0x2c7   :  { %v835_v55 = vmul.f32 %v834_v52, %v748_v24  ;;  %v841_v56 = vadd.f32 %v840_v54, %v838_v51  ;;  %v842_v57 = vsub.f32 %v662_v21, %v834_v52  ;;  %v952_v24 = vld [vmem:[#allocation2 + $0x8] sm:$0xff]  ;;  %v1114_v52 = vsub.f32 1.0, %v1112_v41 }
 0x2c9   :  { %v836_v58 = vadd.f32 %v835_v55, %v747_v28  ;;  %v843_v60 = vand.u32 2147483647, %v842_v57 }
 0x2cb   :  { %v3730_v61 = vadd.f32 %v843_v60, %v841_v56  ;;  %850 = vst.msk [vmem:[%s4055_s17] sm:$0xff] %vm97_vm0, %v836_v58  ;;  %3034 = vmatmul.mubr.msk.f32.vlgmr.msra.gmra.mrb[18].mxu0 %vm97_vm0, %v836_v58 }
 0x2cc   :  { %3163 = vmatpush3.bf16.msra.mxu0 %v3652_v32  ;;  %3040 = vmatprep.mubr.msk.f32.mxu0 %vm3379_vm2, %v3377_v4 }
 0x2cd   :  { %3164 = vmatprep.subr.bf16.mxu0 %v3378_v29 }
 0x39e   :  { %v920_v1 = vpop.f32.mrb[18].mxu0 }
 0x39f   :  { %v921_v3 = vadd.f32 %v920_v1, %v735_v22  ;;  %v3035_v5 = vpop.f32.mrb[19].mxu0 }
 0x3a1   :  { %v925_v7 = vadd.f32 %v921_v3, %v478_v2 }
 0x3a3   :  { %3290 = vtanh.f32 %v925_v7  ;;  %v2891_v9 = vmul.f32 -1.442695, %v925_v7 }
 0x3a5   :  { %3292 = vpow2.f32 %v2891_v9  ;;  %v845_v9 = vmul.f32 %v3730_v61, %v3517_v15 }
 0x3ad   :  { %v3291_v8 = vpop.eup %3290 }
 0x3ae   :  { %935 = vrot.lane.b32.xlu0 %v3291_v8, %s3380_s27 }
 0x3af   :  { %v3293_v10 = vpop.eup %3292 }
 0x3b0   :  { %v929_v11 = vadd.f32 1.0, %v3293_v10 }
 0x3b2   :  { %3294 = vrcp.f32 %v929_v11  ;;  %v847_v11 = vstv %s846_s12 }
 0x3b3   :  { %v848_v15 = vmul.f32 %v847_v11, %v845_v9 }
 0x3bc   :  { %v3295_v12 = vpop.eup %3294 }
 0x3bd   :  { %v933_v38 = vmul.f32 0.0, %v3295_v12 }
 0x420   :  { %v936_v16 = vpop.permute.xlu0 %935 }
 0x421   :  { %v938_v17 = vmul.f32 %v3295_v12, %v936_v16 }
 0x423   :  { %940 = vrot.lane.b32.xlu0 %v938_v17, %s3381_s16 }
 0x495   :  { %v941_v18 = vpop.permute.xlu0 %940 }
 0x496   :  { %v3750_v21 = vadd.f32 %v941_v18, %v933_v38  ;;  %v479_v18 = vadd.f32 %v3744_v63, %v3664_v62 }
 0x498   :  { %3296 = vtanh.f32 %v3750_v21 }
 0x4a2   :  { %v3297_v22 = vpop.eup %3296 }
 0x4a3   :  { %946 = vrot.lane.b32.xlu1 %v3297_v22, %s3380_s27 }
 0x4a7   :  { %954 = vrot.lane.b32.xlu1 %v952_v24, %s3382_s4 }
 0x515   :  { %v947_v25 = vpop.permute.xlu1 %946 }
 0x516   :  { %v949_v26 = vmul.f32 %v3295_v12, %v947_v25  ;;  %v1129_v12 = vstv %s2894_s28 }
 0x519   :  { %v955_v28 = vpop.permute.xlu1 %954 }
 0x51a   :  { %v957_v30 = vmul.f32 %v955_v28, %v949_v26 }
 0x51c   :  { %959 = vrot.lane.b32.xlu0 %v957_v30, %s3381_s16 }
 0x58e   :  { %v960_v31 = vpop.permute.xlu0 %959 }
 0x58f   :  { %2892 = vmatmul.mubr.msk.f32.vlgmr.msra.gmra.mrb[18].mxu1 %vm259_vm1, %v960_v31 }
 0x590   :  { %3170 = vmatpush1.bf16.msra.mxu1 %v3612_v19  ;;  %1309 = vmatprep.mubr.f32.mxu1 %v3377_v4 }
 0x591   :  { %3172 = vmatprep.subr.bf16.mxu1 %v3626_v23 }
 0x594   :  { %3174 = vmatpush1.bf16.msra.mxu1 %v3636_v27 }
 0x595   :  { %3182 = vmatprep.subr.bf16.mxu1 %v3600_v14 }
 0x662   :  { %v1029_v36 = vpop.f32.mrb[18].mxu1 }
 0x663   :  { %v1031_v42 = vpop.f32.mrb[19].mxu1 }
 0x664   :  { %v1034_v43 = vadd.f32 %v3700_v20, %v1031_v42  ;;  %v1234_v42 = vld [vmem:[#allocation2 + $0x10] sm:$0xff] }
 0x666   :  { %v1037_v46 = vmul.f32 %v1036_v40, %v1034_v43  ;;  %v1119_v50 = vsub.f32 %v950_v35, %v1034_v43  ;;  %v1115_v56 = vmul.f32 %v1114_v52, %v1034_v43  ;;  %v1318_v52 = vsub.f32 1.0, %v3563_v53 }
 0x668   :  { %v1038_v47 = vadd.f32 %v1037_v46, %v1035_v45  ;;  %v1120_v58 = vand.u32 2147483647, %v1119_v50 }
 0x66a   :  { %3041 = vmatmul.mubr.msk.f32.vlgmr.msra.gmra.mrb[20].mxu0 %vm97_vm0, %v1038_v47 }
 0x66b   :  { %3166 = vmatpush3.bf16.msra.mxu0 %v3720_v33  ;;  %3047 = vmatprep.mubr.msk.f32.mxu0 %vm3379_vm2, %v3377_v4 }
 0x66c   :  { %3175 = vmatprep.subr.bf16.mxu0 %v3378_v29 }
 0x73d   :  { %v1108_v49 = vpop.f32.mrb[20].mxu0 }
 0x73e   :  { %v1109_v51 = vadd.f32 %v3727_v37, %v1108_v49  ;;  %v3042_v54 = vpop.f32.mrb[21].mxu0 }
 0x740   :  { %v1113_v55 = vmul.f32 %v1112_v41, %v1109_v51  ;;  %v1121_v57 = vsub.f32 %v950_v35, %v1109_v51 }
 0x742   :  { %v1116_v60 = vadd.f32 %v1115_v56, %v1113_v55  ;;  %v1122_v1 = vand.u32 2147483647, %v1121_v57 }
 0x744   :  { %v1117_v2 = vmul.f32 %v1116_v60, %v1036_v40  ;;  %v1123_v3 = vadd.f32 %v1122_v1, %v1120_v58  ;;  %v1124_v5 = vsub.f32 %v950_v35, %v1116_v60  ;;  %v1394_v60 = vld [vmem:[#allocation4 + $0x10] sm:$0xff] }
 0x746   :  { %v1118_v7 = vadd.f32 %v1117_v2, %v1035_v45  ;;  %v1125_v8 = vand.u32 2147483647, %v1124_v5  ;;  %v1396_v5 = vsub.f32 1.0, %v1394_v60 }
 0x748   :  { %v1126_v10 = vadd.f32 %v1125_v8, %v1123_v3  ;;  %1132 = vst.msk [vmem:[%s4055_s17 + $0x8] sm:$0xff] %vm97_vm0, %v1118_v7  ;;  %3048 = vmatmul.mubr.msk.f32.vlgmr.msra.gmra.mrb[22].mxu0 %vm97_vm0, %v1118_v7 }
 0x749   :  { %3177 = vmatpush3.bf16.msra.mxu0 %v3652_v32  ;;  %3054 = vmatprep.mubr.msk.f32.mxu0 %vm3379_vm2, %v3377_v4 }
 0x74a   :  { %v1127_v16 = vmul.f32 %v1126_v10, %v3547_v39  ;;  %3178 = vmatprep.subr.bf16.mxu0 %v3378_v29 }
 0x74c   :  { %v1130_v61 = vmul.f32 %v1129_v12, %v1127_v16 }
 0x74e   :  { %v3786_v17 = vadd.f32 %v1130_v61, %v848_v15 }
 0x81b   :  { %v1202_v38 = vpop.f32.mrb[22].mxu0 }
 0x81c   :  { %v1203_v22 = vadd.f32 %v1202_v38, %v1029_v36  ;;  %v3049_v24 = vpop.f32.mrb[23].mxu0 }
 0x81e   :  { %v1207_v25 = vadd.f32 %v1203_v22, %v479_v18 }
 0x820   :  { %3298 = vtanh.f32 %v1207_v25  ;;  %v2896_v28 = vmul.f32 -1.442695, %v1207_v25  ;;  %v1411_v25 = vstv %s2899_s15 }
 0x822   :  { %3300 = vpow2.f32 %v2896_v28 }
 0x82a   :  { %v3299_v26 = vpop.eup %3298 }
 0x82b   :  { %1217 = vrot.lane.b32.xlu1 %v3299_v26, %s3380_s27 }
 0x82c   :  { %v3301_v39 = vpop.eup %3300 }
 0x82d   :  { %v1211_v30 = vadd.f32 1.0, %v3301_v39 }
 0x82f   :  { %3302 = vrcp.f32 %v1211_v30 }
 0x839   :  { %v3303_v31 = vpop.eup %3302 }
 0x83a   :  { %v1215_v62 = vmul.f32 %v3303_v31, %v3750_v21  ;;  %v1232_v21 = vld [vmem:[%s4064_s20 + $0x10] sm:$0xff] }
 0x83b   :  { %v1317_v56 = vmul.f32 %v1232_v21, %v3563_v53 }
 0x89d   :  { %v1218_v35 = vpop.permute.xlu1 %1217 }
 0x89e   :  { %v1220_v40 = vmul.f32 %v3303_v31, %v1218_v35 }
 0x8a0   :  { %1222 = vrot.lane.b32.xlu0 %v1220_v40, %s3381_s16 }
 0x8a4   :  { %1236 = vrot.lane.b32.xlu0 %v1234_v42, %s3382_s4 }
 0x912   :  { %v1223_v36 = vpop.permute.xlu0 %1222 }
 0x913   :  { %v3794_v43 = vadd.f32 %v1223_v36, %v1215_v62 }
 0x915   :  { %3304 = vtanh.f32 %v3794_v43 }
 0x916   :  { %v1237_v41 = vpop.permute.xlu0 %1236 }
 0x91f   :  { %v3305_v45 = vpop.eup %3304 }
 0x920   :  { %1228 = vrot.lane.b32.xlu1 %v3305_v45, %s3380_s27 }
 0x992   :  { %v1229_v46 = vpop.permute.xlu1 %1228 }
 0x993   :  { %v1231_v47 = vmul.f32 %v3303_v31, %v1229_v46  ;;  %v480_v31 = vadd.f32 %v3744_v63, %v3666_v13 }
 0x995   :  { %v1239_v49 = vmul.f32 %v1237_v41, %v1231_v47  ;;  %v1516_v41 = vld [vmem:[#allocation2 + $0x18] sm:$0xff] }
 0x997   :  { %1241 = vrot.lane.b32.xlu1 %v1239_v49, %s3381_s16 }
 0xa09   :  { %v1242_v50 = vpop.permute.xlu1 %1241 }
 0xa0a   :  { %2897 = vmatmul.mubr.msk.f32.vlgmr.msra.gmra.mrb[20].mxu1 %vm259_vm1, %v1242_v50 }
 0xa0b   :  { %3184 = vmatpush1.bf16.msra.mxu1 %v3612_v19  ;;  %1591 = vmatprep.mubr.f32.mxu1 %v3377_v4 }
 0xa0c   :  { %3186 = vmatprep.subr.bf16.mxu1 %v3626_v23 }
 0xa0f   :  { %3188 = vmatpush1.bf16.msra.mxu1 %v3636_v27 }
 0xa10   :  { %3196 = vmatprep.subr.bf16.mxu1 %v3600_v14 }
 0xadd   :  { %v1311_v51 = vpop.f32.mrb[20].mxu1 }
 0xade   :  { %v1313_v54 = vpop.f32.mrb[21].mxu1 }
 0xadf   :  { %v1316_v55 = vadd.f32 %v3700_v20, %v1313_v54 }
 0xae1   :  { %v1319_v57 = vmul.f32 %v1318_v52, %v1316_v55  ;;  %v1401_v2 = vsub.f32 %v1232_v21, %v1316_v55  ;;  %v1397_v9 = vmul.f32 %v1396_v5, %v1316_v55 }
 0xae3   :  { %v1320_v58 = vadd.f32 %v1319_v57, %v1317_v56  ;;  %v1402_v11 = vand.u32 2147483647, %v1401_v2 }
 0xae5   :  { %3055 = vmatmul.mubr.msk.f32.vlgmr.msra.gmra.mrb[24].mxu0 %vm97_vm0, %v1320_v58  ;;  %v1600_v58 = vsub.f32 1.0, %v3573_v0 }
 0xae6   :  { %3180 = vmatpush3.bf16.msra.mxu0 %v3720_v33  ;;  %3061 = vmatprep.mubr.msk.f32.mxu0 %vm3379_vm2, %v3377_v4 }
 0xae7   :  { %3189 = vmatprep.subr.bf16.mxu0 %v3378_v29 }
 0xbb8   :  { %v1390_v1 = vpop.f32.mrb[24].mxu0 }
 0xbb9   :  { %v1391_v3 = vadd.f32 %v3727_v37, %v1390_v1  ;;  %v3056_v7 = vpop.f32.mrb[25].mxu0 }
 0xbba   :  { %v1676_v7 = vld [vmem:[#allocation4 + $0x18] sm:$0xff] }
 0xbbb   :  { %v1395_v8 = vmul.f32 %v1394_v60, %v1391_v3  ;;  %v1403_v10 = vsub.f32 %v1232_v21, %v1391_v3 }
 0xbbd   :  { %v1398_v12 = vadd.f32 %v1397_v9, %v1395_v8  ;;  %v1404_v16 = vand.u32 2147483647, %v1403_v10 }
 0xbbf   :  { %v1399_v15 = vmul.f32 %v1398_v12, %v1318_v52  ;;  %v1405_v61 = vadd.f32 %v1404_v16, %v1402_v11  ;;  %v1406_v38 = vsub.f32 %v1232_v21, %v1398_v12  ;;  %v1678_v11 = vsub.f32 1.0, %v1676_v7 }
 0xbc1   :  { %v1400_v18 = vadd.f32 %v1399_v15, %v1317_v56  ;;  %v1407_v22 = vand.u32 2147483647, %v1406_v38 }
 0xbc3   :  { %v1408_v24 = vadd.f32 %v1407_v22, %v1405_v61  ;;  %1414 = vst.msk [vmem:[%s4055_s17 + $0x10] sm:$0xff] %vm97_vm0, %v1400_v18  ;;  %3062 = vmatmul.mubr.msk.f32.vlgmr.msra.gmra.mrb[26].mxu0 %vm97_vm0, %v1400_v18 }
 0xbc4   :  { %3191 = vmatpush3.bf16.msra.mxu0 %v3652_v32  ;;  %3068 = vmatprep.mubr.msk.f32.mxu0 %vm3379_vm2, %v3377_v4 }
 0xbc5   :  { %v1409_v26 = vmul.f32 %v1408_v24, %v3563_v53  ;;  %3192 = vmatprep.subr.bf16.mxu0 %v3378_v29 }
 0xbc7   :  { %v1412_v28 = vmul.f32 %v1411_v25, %v1409_v26 }
 0xbc9   :  { %v3828_v39 = vadd.f32 %v1412_v28, %v3786_v17 }
 0xc96   :  { %v1484_v30 = vpop.f32.mrb[26].mxu0 }
 0xc97   :  { %v1485_v35 = vadd.f32 %v1484_v30, %v1311_v51  ;;  %v3063_v40 = vpop.f32.mrb[27].mxu0 }
 0xc99   :  { %v1489_v42 = vadd.f32 %v1485_v35, %v480_v31  ;;  %v1693_v35 = vstv %s2904_s22 }
 0xc9b   :  { %3306 = vtanh.f32 %v1489_v42  ;;  %v2901_v36 = vmul.f32 -1.442695, %v1489_v42 }
 0xc9d   :  { %3308 = vpow2.f32 %v2901_v36 }
 0xca5   :  { %v3307_v62 = vpop.eup %3306 }
 0xca6   :  { %1499 = vrot.lane.b32.xlu0 %v3307_v62, %s3380_s27 }
 0xca7   :  { %v3309_v53 = vpop.eup %3308 }
 0xca8   :  { %v1493_v45 = vadd.f32 1.0, %v3309_v53  ;;  %v481_v53 = vadd.f32 %v3744_v63, %v3671_v34 }
 0xcaa   :  { %3310 = vrcp.f32 %v1493_v45 }
 0xcb4   :  { %v3311_v46 = vpop.eup %3310 }
 0xcb5   :  { %v1497_v13 = vmul.f32 %v3311_v46, %v3794_v43  ;;  %v1514_v43 = vld [vmem:[%s4064_s20 + $0x18] sm:$0xff] }
 0xcb6   :  { %v1599_v2 = vmul.f32 %v1514_v43, %v3573_v0 }
 0xd18   :  { %v1500_v47 = vpop.permute.xlu0 %1499 }
 0xd19   :  { %v1502_v17 = vmul.f32 %v3311_v46, %v1500_v47 }
 0xd1b   :  { %1504 = vrot.lane.b32.xlu1 %v1502_v17, %s3381_s16 }
 0xd1f   :  { %1518 = vrot.lane.b32.xlu1 %v1516_v41, %s3382_s4 }
 0xd8d   :  { %v1505_v49 = vpop.permute.xlu1 %1504 }
 0xd8e   :  { %v3836_v50 = vadd.f32 %v1505_v49, %v1497_v13 }
 0xd90   :  { %3312 = vtanh.f32 %v3836_v50 }
 0xd91   :  { %v1519_v54 = vpop.permute.xlu1 %1518 }
 0xd9a   :  { %v3313_v21 = vpop.eup %3312 }
 0xd9b   :  { %1510 = vrot.lane.b32.xlu0 %v3313_v21, %s3380_s27 }
 0xe0d   :  { %v1511_v51 = vpop.permute.xlu0 %1510 }
 0xe0e   :  { %v1513_v52 = vmul.f32 %v3311_v46, %v1511_v51  ;;  %v1798_v51 = vld [vmem:[#allocation2 + $0x20] sm:$0xff] }
 0xe10   :  { %v1521_v55 = vmul.f32 %v1519_v54, %v1513_v52 }
 0xe12   :  { %1523 = vrot.lane.b32.xlu0 %v1521_v55, %s3381_s16 }
 0xe84   :  { %v1524_v56 = vpop.permute.xlu0 %1523 }
 0xe85   :  { %2902 = vmatmul.mubr.msk.f32.vlgmr.msra.gmra.mrb[22].mxu1 %vm259_vm1, %v1524_v56 }
 0xe86   :  { %3198 = vmatpush1.bf16.msra.mxu1 %v3612_v19  ;;  %1873 = vmatprep.mubr.f32.mxu1 %v3377_v4 }
 0xe87   :  { %3200 = vmatprep.subr.bf16.mxu1 %v3626_v23 }
 0xe8a   :  { %3202 = vmatpush1.bf16.msra.mxu1 %v3636_v27 }
 0xe8b   :  { %3210 = vmatprep.subr.bf16.mxu1 %v3600_v14 }
 0xf58   :  { %v1593_v57 = vpop.f32.mrb[22].mxu1 }
 0xf59   :  { %v1595_v60 = vpop.f32.mrb[23].mxu1 }
 0xf5a   :  { %v1598_v1 = vadd.f32 %v3700_v20, %v1595_v60 }
 0xf5c   :  { %v1601_v3 = vmul.f32 %v1600_v58, %v1598_v1  ;;  %v1683_v9 = vsub.f32 %v1514_v43, %v1598_v1  ;;  %v1679_v15 = vmul.f32 %v1678_v11, %v1598_v1 }
 0xf5e   :  { %v1602_v5 = vadd.f32 %v1601_v3, %v1599_v2  ;;  %v1684_v38 = vand.u32 2147483647, %v1683_v9 }
 0xf60   :  { %3069 = vmatmul.mubr.msk.f32.vlgmr.msra.gmra.mrb[28].mxu0 %vm97_vm0, %v1602_v5 }
 0xf61   :  { %3194 = vmatpush3.bf16.msra.mxu0 %v3720_v33  ;;  %3075 = vmatprep.mubr.msk.f32.mxu0 %vm3379_vm2, %v3377_v4 }
 0xf62   :  { %3203 = vmatprep.subr.bf16.mxu0 %v3378_v29 }
0x1033   :  { %v1672_v8 = vpop.f32.mrb[28].mxu0 }
0x1034   :  { %v1673_v10 = vadd.f32 %v3727_v37, %v1672_v8  ;;  %v3070_v12 = vpop.f32.mrb[29].mxu0 }
0x1036   :  { %v1677_v16 = vmul.f32 %v1676_v7, %v1673_v10  ;;  %v1685_v61 = vsub.f32 %v1514_v43, %v1673_v10  ;;  %v1958_v10 = vld [vmem:[#allocation4 + $0x20] sm:$0xff] }
0x1038   :  { %v1680_v18 = vadd.f32 %v1679_v15, %v1677_v16  ;;  %v1686_v22 = vand.u32 2147483647, %v1685_v61  ;;  %v1960_v15 = vsub.f32 1.0, %v1958_v10 }
0x103a   :  { %v1681_v24 = vmul.f32 %v1680_v18, %v1600_v58  ;;  %v1687_v25 = vadd.f32 %v1686_v22, %v1684_v38  ;;  %v1688_v26 = vsub.f32 %v1514_v43, %v1680_v18 }
0x103c   :  { %v1682_v28 = vadd.f32 %v1681_v24, %v1599_v2  ;;  %v1689_v30 = vand.u32 2147483647, %v1688_v26  ;;  %v1882_v2 = vsub.f32 1.0, %v3582_v6 }
0x103e   :  { %v1690_v31 = vadd.f32 %v1689_v30, %v1687_v25  ;;  %1696 = vst.msk [vmem:[%s4055_s17 + $0x18] sm:$0xff] %vm97_vm0, %v1682_v28  ;;  %3076 = vmatmul.mubr.msk.f32.vlgmr.msra.gmra.mrb[30].mxu0 %vm97_vm0, %v1682_v28 }
0x103f   :  { %3205 = vmatpush3.bf16.msra.mxu0 %v3652_v32  ;;  %3082 = vmatprep.mubr.msk.f32.mxu0 %vm3379_vm2, %v3377_v4 }
0x1040   :  { %v1691_v40 = vmul.f32 %v1690_v31, %v3573_v0  ;;  %3206 = vmatprep.subr.bf16.mxu0 %v3378_v29 }
0x1042   :  { %v1694_v42 = vmul.f32 %v1693_v35, %v1691_v40 }
0x1044   :  { %v3870_v62 = vadd.f32 %v1694_v42, %v3828_v39  ;;  %v1975_v42 = vstv %s2909_s9 }
0x1111   :  { %v1766_v36 = vpop.f32.mrb[30].mxu0 }
0x1112   :  { %v1767_v45 = vadd.f32 %v1766_v36, %v1593_v57  ;;  %v3077_v46 = vpop.f32.mrb[31].mxu0  ;;  %v3346_v36 = vld [vmem:[%s4063_s8 + $0x20] sm:$0xff] }
0x1114   :  { %v1771_v47 = vadd.f32 %v1767_v45, %v481_v53 }
0x1116   :  { %3314 = vtanh.f32 %v1771_v47  ;;  %v2906_v41 = vmul.f32 -1.442695, %v1771_v47 }
0x1118   :  { %3316 = vpow2.f32 %v2906_v41 }
0x1120   :  { %v3315_v17 = vpop.eup %3314 }
0x1121   :  { %1781 = vrot.lane.b32.xlu1 %v3315_v17, %s3380_s27  ;;  %v482_v17 = vadd.f32 %v3744_v63, %v3674_v44 }
0x1122   :  { %v3317_v0 = vpop.eup %3316 }
0x1123   :  { %v1775_v13 = vadd.f32 1.0, %v3317_v0 }
0x1125   :  { %3318 = vrcp.f32 %v1775_v13 }
0x112f   :  { %v3319_v49 = vpop.eup %3318 }
0x1130   :  { %v1779_v34 = vmul.f32 %v3319_v49, %v3836_v50  ;;  %v1796_v50 = vld [vmem:[%s4064_s20 + $0x20] sm:$0xff] }
0x1131   :  { %v1881_v7 = vmul.f32 %v1796_v50, %v3582_v6 }
0x1193   :  { %v1782_v21 = vpop.permute.xlu1 %1781 }
0x1194   :  { %v1784_v39 = vmul.f32 %v3319_v49, %v1782_v21 }
0x1196   :  { %1786 = vrot.lane.b32.xlu0 %v1784_v39, %s3381_s16 }
0x119a   :  { %1800 = vrot.lane.b32.xlu0 %v1798_v51, %s3382_s4 }
0x1208   :  { %v1787_v52 = vpop.permute.xlu0 %1786 }
0x1209   :  { %v3878_v54 = vadd.f32 %v1787_v52, %v1779_v34 }
0x120b   :  { %3320 = vtanh.f32 %v3878_v54 }
0x120c   :  { %v1801_v57 = vpop.permute.xlu0 %1800 }
0x1215   :  { %v3321_v55 = vpop.eup %3320 }
0x1216   :  { %1792 = vrot.lane.b32.xlu1 %v3321_v55, %s3380_s27  ;;  %v2080_v55 = vld [vmem:[#allocation2 + $0x28] sm:$0xff] }
0x1288   :  { %v1793_v56 = vpop.permute.xlu1 %1792 }
0x1289   :  { %v1795_v43 = vmul.f32 %v3319_v49, %v1793_v56 }
0x128b   :  { %v1803_v58 = vmul.f32 %v1801_v57, %v1795_v43 }
0x128d   :  { %1805 = vrot.lane.b32.xlu1 %v1803_v58, %s3381_s16 }
0x12ff   :  { %v1806_v60 = vpop.permute.xlu1 %1805 }
0x1300   :  { %2907 = vmatmul.mubr.msk.f32.vlgmr.msra.gmra.mrb[24].mxu1 %vm259_vm1, %v1806_v60 }
0x1301   :  { %3212 = vmatpush1.bf16.msra.mxu1 %v3612_v19  ;;  %2155 = vmatprep.mubr.f32.mxu1 %v3377_v4 }
0x1302   :  { %3214 = vmatprep.subr.bf16.mxu1 %v3626_v23 }
0x1305   :  { %3216 = vmatpush1.bf16.msra.mxu1 %v3636_v27 }
0x1306   :  { %3224 = vmatprep.subr.bf16.mxu1 %v3600_v14 }
0x13d3   :  { %v1875_v1 = vpop.f32.mrb[24].mxu1 }
0x13d4   :  { %v1877_v3 = vpop.f32.mrb[25].mxu1 }
0x13d5   :  { %v1880_v5 = vadd.f32 %v3700_v20, %v1877_v3 }
0x13d7   :  { %v1883_v8 = vmul.f32 %v1882_v2, %v1880_v5  ;;  %v1965_v12 = vsub.f32 %v1796_v50, %v1880_v5  ;;  %v1961_v6 = vmul.f32 %v1960_v15, %v1880_v5  ;;  %v3347_v5 = vld [vmem:[%s4063_s8 + $0x28] sm:$0xff] }
0x13d9   :  { %v1884_v9 = vadd.f32 %v1883_v8, %v1881_v7  ;;  %v1966_v22 = vand.u32 2147483647, %v1965_v12 }
0x13db   :  { %3083 = vmatmul.mubr.msk.f32.vlgmr.msra.gmra.mrb[32].mxu0 %vm97_vm0, %v1884_v9 }
0x13dc   :  { %3208 = vmatpush3.bf16.msra.mxu0 %v3720_v33  ;;  %3089 = vmatprep.mubr.msk.f32.mxu0 %vm3379_vm2, %v3377_v4 }
0x13dd   :  { %3217 = vmatprep.subr.bf16.mxu0 %v3378_v29 }
0x14ae   :  { %v1954_v11 = vpop.f32.mrb[32].mxu0 }
0x14af   :  { %v1955_v16 = vadd.f32 %v3727_v37, %v1954_v11  ;;  %v3084_v61 = vpop.f32.mrb[33].mxu0 }
0x14b1   :  { %v1959_v38 = vmul.f32 %v1958_v10, %v1955_v16  ;;  %v1967_v18 = vsub.f32 %v1796_v50, %v1955_v16 }
0x14b3   :  { %v1962_v24 = vadd.f32 %v1961_v6, %v1959_v38  ;;  %v1968_v25 = vand.u32 2147483647, %v1967_v18 }
0x14b5   :  { %v1963_v26 = vmul.f32 %v1962_v24, %v1882_v2  ;;  %v1969_v28 = vadd.f32 %v1968_v25, %v1966_v22  ;;  %v1970_v30 = vsub.f32 %v1796_v50, %v1962_v24 }
0x14b7   :  { %v1964_v31 = vadd.f32 %v1963_v26, %v1881_v7  ;;  %v1971_v35 = vand.u32 2147483647, %v1970_v30  ;;  %v2164_v7 = vsub.f32 1.0, %v3347_v5 }
0x14b9   :  { %v1972_v40 = vadd.f32 %v1971_v35, %v1969_v28  ;;  %1978 = vst.msk [vmem:[%s4055_s17 + $0x20] sm:$0xff] %vm97_vm0, %v1964_v31  ;;  %3090 = vmatmul.mubr.msk.f32.vlgmr.msra.gmra.mrb[34].mxu0 %vm97_vm0, %v1964_v31 }
0x14ba   :  { %3219 = vmatpush3.bf16.msra.mxu0 %v3652_v32  ;;  %3096 = vmatprep.mubr.msk.f32.mxu0 %vm3379_vm2, %v3377_v4 }
0x14bb   :  { %v1973_v53 = vmul.f32 %v3346_v36, %v1972_v40  ;;  %3220 = vmatprep.subr.bf16.mxu0 %v3378_v29 }
0x14bd   :  { %v1976_v45 = vmul.f32 %v1975_v42, %v1973_v53  ;;  %v2257_v53 = vstv %s2914_s30 }
0x14bf   :  { %v3914_v46 = vadd.f32 %v1976_v45, %v3870_v62 }
0x158c   :  { %v2048_v47 = vpop.f32.mrb[34].mxu0 }
0x158d   :  { %v2049_v41 = vadd.f32 %v2048_v47, %v1875_v1  ;;  %v3091_v0 = vpop.f32.mrb[35].mxu0 }
0x158e   :  { %v483_v0 = vadd.f32 %v3744_v63, %v3679_v48 }
0x158f   :  { %v2053_v13 = vadd.f32 %v2049_v41, %v482_v17 }
0x1591   :  { %3322 = vtanh.f32 %v2053_v13  ;;  %v2911_v21 = vmul.f32 -1.442695, %v2053_v13 }
0x1593   :  { %3324 = vpow2.f32 %v2911_v21 }
0x159b   :  { %v3323_v49 = vpop.eup %3322 }
0x159c   :  { %2063 = vrot.lane.b32.xlu0 %v3323_v49, %s3380_s27 }
0x159d   :  { %v3325_v39 = vpop.eup %3324 }
0x159e   :  { %v2057_v51 = vadd.f32 1.0, %v3325_v39 }
0x15a0   :  { %3326 = vrcp.f32 %v2057_v51 }
0x15aa   :  { %v3327_v34 = vpop.eup %3326 }
0x15ab   :  { %v2061_v44 = vmul.f32 %v3327_v34, %v3878_v54  ;;  %v2078_v54 = vld [vmem:[%s4064_s20 + $0x28] sm:$0xff] }
0x15ac   :  { %v2163_v10 = vmul.f32 %v3347_v5, %v2078_v54 }
0x160e   :  { %v2064_v52 = vpop.permute.xlu0 %2063 }
0x160f   :  { %v2066_v62 = vmul.f32 %v3327_v34, %v2064_v52 }
0x1611   :  { %2068 = vrot.lane.b32.xlu1 %v2066_v62, %s3381_s16 }
0x1615   :  { %2082 = vrot.lane.b32.xlu1 %v2080_v55, %s3382_s4 }
0x1683   :  { %v2069_v56 = vpop.permute.xlu1 %2068 }
0x1684   :  { %v3922_v43 = vadd.f32 %v2069_v56, %v2061_v44  ;;  %v2362_v44 = vld [vmem:[#allocation2 + $0x30] sm:$0xff] }
0x1686   :  { %3328 = vtanh.f32 %v3922_v43 }
0x1687   :  { %v2083_v50 = vpop.permute.xlu1 %2082 }
0x1690   :  { %v3329_v57 = vpop.eup %3328 }
0x1691   :  { %2074 = vrot.lane.b32.xlu0 %v3329_v57, %s3380_s27 }
0x1703   :  { %v2075_v58 = vpop.permute.xlu0 %2074 }
0x1704   :  { %v2077_v60 = vmul.f32 %v3327_v34, %v2075_v58 }
0x1706   :  { %v2085_v1 = vmul.f32 %v2083_v50, %v2077_v60 }
0x1708   :  { %2087 = vrot.lane.b32.xlu0 %v2085_v1, %s3381_s16 }
0x177a   :  { %v2088_v2 = vpop.permute.xlu0 %2087 }
0x177b   :  { %2912 = vmatmul.mubr.msk.f32.vlgmr.msra.gmra.mrb[26].mxu1 %vm259_vm1, %v2088_v2 }
0x177c   :  { %3226 = vmatpush1.bf16.msra.mxu1 %v3612_v19  ;;  %2437 = vmatprep.mubr.f32.mxu1 %v3377_v4 }
0x177d   :  { %3228 = vmatprep.subr.bf16.mxu1 %v3626_v23 }
0x1780   :  { %3230 = vmatpush1.bf16.msra.mxu1 %v3636_v27 }
0x1781   :  { %3238 = vmatprep.subr.bf16.mxu1 %v3600_v14  ;;  %v2240_v14 = vld [vmem:[#allocation4 + $0x28] sm:$0xff] }
0x1782   :  { %v2242_v38 = vsub.f32 1.0, %v2240_v14 }
0x184e   :  { %v2157_v3 = vpop.f32.mrb[26].mxu1 }
0x184f   :  { %v2159_v8 = vpop.f32.mrb[27].mxu1 }
0x1850   :  { %v2162_v9 = vadd.f32 %v3700_v20, %v2159_v8 }
0x1852   :  { %v2165_v11 = vmul.f32 %v2164_v7, %v2162_v9  ;;  %v2247_v15 = vsub.f32 %v2078_v54, %v2162_v9  ;;  %v2243_v22 = vmul.f32 %v2242_v38, %v2162_v9 }
0x1854   :  { %v2166_v12 = vadd.f32 %v2165_v11, %v2163_v10  ;;  %v2248_v25 = vand.u32 2147483647, %v2247_v15 }
0x1856   :  { %3097 = vmatmul.mubr.msk.f32.vlgmr.msra.gmra.mrb[36].mxu0 %vm97_vm0, %v2166_v12 }
0x1857   :  { %3222 = vmatpush3.bf16.msra.mxu0 %v3720_v33  ;;  %3103 = vmatprep.mubr.msk.f32.mxu0 %vm3379_vm2, %v3377_v4 }
0x1858   :  { %3231 = vmatprep.subr.bf16.mxu0 %v3378_v29 }
0x1929   :  { %v2236_v16 = vpop.f32.mrb[36].mxu0 }
0x192a   :  { %v2237_v61 = vadd.f32 %v3727_v37, %v2236_v16  ;;  %v3098_v6 = vpop.f32.mrb[37].mxu0 }
0x192c   :  { %v2241_v18 = vmul.f32 %v2240_v14, %v2237_v61  ;;  %v2249_v24 = vsub.f32 %v2078_v54, %v2237_v61 }
0x192e   :  { %v2244_v26 = vadd.f32 %v2243_v22, %v2241_v18  ;;  %v2250_v28 = vand.u32 2147483647, %v2249_v24 }
0x1930   :  { %v2245_v30 = vmul.f32 %v2244_v26, %v2164_v7  ;;  %v2251_v31 = vadd.f32 %v2250_v28, %v2248_v25  ;;  %v2252_v35 = vsub.f32 %v2078_v54, %v2244_v26 }
0x1932   :  { %v2246_v40 = vadd.f32 %v2245_v30, %v2163_v10  ;;  %v2253_v42 = vand.u32 2147483647, %v2252_v35 }
0x1934   :  { %v2254_v36 = vadd.f32 %v2253_v42, %v2251_v31  ;;  %2260 = vst.msk [vmem:[%s4055_s17 + $0x28] sm:$0xff] %vm97_vm0, %v2246_v40  ;;  %3104 = vmatmul.mubr.msk.f32.vlgmr.msra.gmra.mrb[38].mxu0 %vm97_vm0, %v2246_v40  ;;  %v484_v42 = vadd.f32 %v3744_v63, %v3683_v59 }
0x1935   :  { %3233 = vmatpush3.bf16.msra.mxu0 %v3652_v32  ;;  %3110 = vmatprep.mubr.msk.f32.mxu0 %vm3379_vm2, %v3377_v4 }
0x1936   :  { %v2255_v45 = vmul.f32 %v3347_v5, %v2254_v36  ;;  %3234 = vmatprep.subr.bf16.mxu0 %v3378_v29 }
0x1938   :  { %v2258_v47 = vmul.f32 %v2257_v53, %v2255_v45 }
0x193a   :  { %v3956_v17 = vadd.f32 %v2258_v47, %v3914_v46 }
0x1a07   :  { %v2330_v41 = vpop.f32.mrb[38].mxu0 }
0x1a08   :  { %v2331_v13 = vadd.f32 %v2330_v41, %v2157_v3  ;;  %v3105_v49 = vpop.f32.mrb[39].mxu0  ;;  %v2360_v3 = vld [vmem:[%s4064_s20 + $0x30] sm:$0xff] }
0x1a09   :  { %v2644_v49 = vld [vmem:[#allocation2 + $0x38] sm:$0xff] }
0x1a0a   :  { %v2335_v21 = vadd.f32 %v2331_v13, %v483_v0 }
0x1a0c   :  { %3330 = vtanh.f32 %v2335_v21  ;;  %v2916_v51 = vmul.f32 -1.442695, %v2335_v21 }
0x1a0e   :  { %3332 = vpow2.f32 %v2916_v51 }
0x1a16   :  { %v3331_v39 = vpop.eup %3330 }
0x1a17   :  { %2345 = vrot.lane.b32.xlu1 %v3331_v39, %s3380_s27 }
0x1a18   :  { %v3333_v34 = vpop.eup %3332 }
0x1a19   :  { %v2339_v52 = vadd.f32 1.0, %v3333_v34 }
0x1a1b   :  { %3334 = vrcp.f32 %v2339_v52 }
0x1a25   :  { %v3335_v62 = vpop.eup %3334 }
0x1a26   :  { %v2343_v48 = vmul.f32 %v3335_v62, %v3922_v43  ;;  %v2361_v43 = vld [vmem:[%s4063_s8 + $0x30] sm:$0xff] }
0x1a27   :  { %v2446_v7 = vsub.f32 1.0, %v2361_v43 }
0x1a89   :  { %v2346_v55 = vpop.permute.xlu1 %2345 }
0x1a8a   :  { %v2348_v46 = vmul.f32 %v3335_v62, %v2346_v55 }
0x1a8c   :  { %2350 = vrot.lane.b32.xlu0 %v2348_v46, %s3381_s16  ;;  %v2643_v46 = vld [vmem:[%s4063_s8 + $0x38] sm:$0xff] }
0x1a90   :  { %2364 = vrot.lane.b32.xlu0 %v2362_v44, %s3382_s4  ;;  %v2642_v44 = vld [vmem:[%s4064_s20 + $0x38] sm:$0xff] }
0x1afe   :  { %v2351_v56 = vpop.permute.xlu0 %2350 }
0x1aff   :  { %v3964_v57 = vadd.f32 %v2351_v56, %v2343_v48  ;;  %v2727_v56 = vsub.f32 1.0, %v2643_v46 }
0x1b01   :  { %3336 = vtanh.f32 %v3964_v57 }
0x1b02   :  { %v2365_v1 = vpop.permute.xlu0 %2364 }
0x1b0b   :  { %v3337_v58 = vpop.eup %3336 }
0x1b0c   :  { %2356 = vrot.lane.b32.xlu1 %v3337_v58, %s3380_s27  ;;  %v3348_v58 = vld [vmem:[%s4051_s13] ss:$0 sm:$0xff]  ;;  %s2924_s13 = sld [smem:[#allocation5 + $0x7]] }
0x1b7e   :  { %v2357_v60 = vpop.permute.xlu1 %2356 }
0x1b7f   :  { %v2359_v50 = vmul.f32 %v3335_v62, %v2357_v60 }
0x1b81   :  { %v2367_v2 = vmul.f32 %v2365_v1, %v2359_v50  ;;  %v2726_v50 = vmul.f32 %v2643_v46, %v2642_v44 }
0x1b83   :  { %2369 = vrot.lane.b32.xlu1 %v2367_v2, %s3381_s16 }
0x1bf5   :  { %v2370_v54 = vpop.permute.xlu1 %2369 }
0x1bf6   :  { %2917 = vmatmul.mubr.msk.f32.vlgmr.msra.gmra.mrb[28].mxu1 %vm259_vm1, %v2370_v54  ;;  %v2803_v54 = vld [vmem:[#allocation4 + $0x38] sm:$0xff] }
0x1bf7   :  { %3240 = vmatpush1.bf16.msra.mxu1 %v3612_v19  ;;  %2719 = vmatprep.mubr.f32.mxu1 %v3377_v4  ;;  %v2445_v19 = vmul.f32 %v2361_v43, %v2360_v3 }
0x1bf8   :  { %3242 = vmatprep.subr.bf16.mxu1 %v3626_v23  ;;  %v2522_v23 = vld [vmem:[#allocation4 + $0x30] sm:$0xff] }
0x1bf9   :  { %v2524_v16 = vsub.f32 1.0, %v2522_v23 }
0x1bfb   :  { %3244 = vmatpush1.bf16.msra.mxu1 %v3636_v27 }
0x1cc9   :  { %v2439_v5 = vpop.f32.mrb[28].mxu1 }
0x1cca   :  { %v2441_v8 = vpop.f32.mrb[29].mxu1 }
0x1ccb   :  { %v2444_v9 = vadd.f32 %v3700_v20, %v2441_v8  ;;  %v2805_v8 = vsub.f32 1.0, %v2803_v54 }
0x1ccd   :  { %v2447_v10 = vmul.f32 %v2446_v7, %v2444_v9  ;;  %v2529_v12 = vsub.f32 %v2360_v3, %v2444_v9  ;;  %v2525_v61 = vmul.f32 %v2524_v16, %v2444_v9 }
0x1ccf   :  { %v2448_v11 = vadd.f32 %v2447_v10, %v2445_v19  ;;  %v2530_v6 = vand.u32 2147483647, %v2529_v12 }
0x1cd1   :  { %3111 = vmatmul.mubr.msk.f32.vlgmr.msra.gmra.mrb[40].mxu0 %vm97_vm0, %v2448_v11 }
0x1cd2   :  { %3236 = vmatpush3.bf16.msra.mxu0 %v3720_v33  ;;  %3117 = vmatprep.mubr.msk.f32.mxu0 %vm3379_vm2, %v3377_v4 }
0x1cd3   :  { %3245 = vmatprep.subr.bf16.mxu0 %v3378_v29 }
0x1da4   :  { %v2518_v27 = vpop.f32.mrb[40].mxu0 }
0x1da5   :  { %v2519_v14 = vadd.f32 %v3727_v37, %v2518_v27  ;;  %v3112_v15 = vpop.f32.mrb[41].mxu0  ;;  %v2539_v37 = vstv %s2919_s21 }
0x1da7   :  { %v2523_v20 = vmul.f32 %v2522_v23, %v2519_v14  ;;  %v2531_v38 = vsub.f32 %v2360_v3, %v2519_v14 }
0x1da9   :  { %v2526_v18 = vadd.f32 %v2525_v61, %v2523_v20  ;;  %v2532_v22 = vand.u32 2147483647, %v2531_v38 }
0x1dab   :  { %v2527_v33 = vmul.f32 %v2526_v18, %v2446_v7  ;;  %v2533_v24 = vadd.f32 %v2532_v22, %v2530_v6  ;;  %v2534_v25 = vsub.f32 %v2360_v3, %v2526_v18  ;;  %v2820_v6 = vstv %s2924_s13 }
0x1dad   :  { %v2528_v26 = vadd.f32 %v2527_v33, %v2445_v19  ;;  %v2535_v28 = vand.u32 2147483647, %v2534_v25 }
0x1daf   :  { %v2536_v29 = vadd.f32 %v2535_v28, %v2533_v24  ;;  %2542 = vst.msk [vmem:[%s4055_s17 + $0x30] sm:$0xff] %vm97_vm0, %v2528_v26  ;;  %3118 = vmatmul.mubr.msk.f32.vlgmr.msra.gmra.mrb[42].mxu0 %vm97_vm0, %v2528_v26 }
0x1db0   :  { %3247 = vmatpush3.bf16.msra.mxu0 %v3652_v32  ;;  %3124 = vmatprep.mubr.msk.f32.mxu0 %vm3379_vm2, %v3377_v4 }
0x1db1   :  { %v2537_v30 = vmul.f32 %v2536_v29, %v2361_v43 }
0x1db3   :  { %v2540_v31 = vmul.f32 %v2539_v37, %v2537_v30 }
0x1db5   :  { %v3996_v35 = vadd.f32 %v2540_v31, %v3956_v17 }
0x1e82   :  { %v2612_v40 = vpop.f32.mrb[42].mxu0 }
0x1e83   :  { %v2613_v36 = vadd.f32 %v2612_v40, %v2439_v5  ;;  %v3119_v53 = vpop.f32.mrb[43].mxu0  ;;  %v3349_v5 = vld [vmem:[%s4052_s14] ss:$0 sm:$0xff] }
0x1e85   :  { %v2617_v45 = vadd.f32 %v2613_v36, %v484_v42 }
0x1e87   :  { %3338 = vtanh.f32 %v2617_v45  ;;  %v2921_v32 = vmul.f32 -1.442695, %v2617_v45 }
0x1e89   :  { %3340 = vpow2.f32 %v2921_v32 }
0x1e91   :  { %v3339_v47 = vpop.eup %3338 }
0x1e92   :  { %2627 = vrot.lane.b32.xlu0 %v3339_v47, %s3380_s27 }
0x1e93   :  { %v3341_v4 = vpop.eup %3340 }
0x1e94   :  { %v2621_v41 = vadd.f32 1.0, %v3341_v4 }
0x1e96   :  { %3342 = vrcp.f32 %v2621_v41 }
0x1ea0   :  { %v3343_v0 = vpop.eup %3342 }
0x1ea1   :  { %v2625_v59 = vmul.f32 %v3343_v0, %v3964_v57 }
0x1f04   :  { %v2628_v13 = vpop.permute.xlu0 %2627 }
0x1f05   :  { %v2630_v17 = vmul.f32 %v3343_v0, %v2628_v13 }
0x1f07   :  { %2632 = vrot.lane.b32.xlu1 %v2630_v17, %s3381_s16 }
0x1f0b   :  { %2646 = vrot.lane.b32.xlu1 %v2644_v49, %s3382_s4 }
0x1f79   :  { %v2633_v63 = vpop.permute.xlu1 %2632 }
0x1f7a   :  { %v2635_v21 = vadd.f32 %v2633_v63, %v2625_v59 }
0x1f7c   :  { %3344 = vtanh.f32 %v2635_v21 }
0x1f7d   :  { %v2647_v52 = vpop.permute.xlu1 %2646 }
0x1f86   :  { %v3345_v39 = vpop.eup %3344 }
0x1f87   :  { %2638 = vrot.lane.b32.xlu0 %v3345_v39, %s3380_s27 }
0x1ff9   :  { %v2639_v51 = vpop.permute.xlu0 %2638 }
0x1ffa   :  { %v2641_v34 = vmul.f32 %v3343_v0, %v2639_v51 }
0x1ffc   :  { %v2649_v62 = vmul.f32 %v2647_v52, %v2641_v34 }
0x1ffe   :  { %2651 = vrot.lane.b32.xlu0 %v2649_v62, %s3381_s16 }
0x2070   :  { %v2652_v55 = vpop.permute.xlu0 %2651 }
0x2071   :  { %2922 = vmatmul.mubr.msk.f32.vlgmr.msra.gmra.mrb[30].mxu1 %vm259_vm1, %v2652_v55 }
0x2144   :  { %v2721_v48 = vpop.f32.mrb[30].mxu1 }
0x2145   :  { %v2722_v57 = vpop.f32.mrb[31].mxu1 }
0x2146   :  { %v2725_v60 = vadd.f32 %v3348_v58, %v2722_v57 }
0x2148   :  { %v2728_v1 = vmul.f32 %v2727_v56, %v2725_v60  ;;  %v2810_v3 = vsub.f32 %v2642_v44, %v2725_v60  ;;  %v2806_v10 = vmul.f32 %v2805_v8, %v2725_v60 }
0x214a   :  { %v2729_v2 = vadd.f32 %v2728_v1, %v2726_v50  ;;  %v2811_v23 = vand.u32 2147483647, %v2810_v3 }
0x214c   :  { %3125 = vmatmul.mubr.msk.f32.vlgmr.msra.gmra.mrb[44].mxu0 %vm97_vm0, %v2729_v2 }
0x221f   :  { %v2799_v43 = vpop.f32.mrb[44].mxu0 }
0x2220   :  { %v2800_v7 = vadd.f32 %v3349_v5, %v2799_v43  ;;  %v3126_v9 = vpop.f32.mrb[45].mxu0 }
0x2222   :  { %v2804_v19 = vmul.f32 %v2803_v54, %v2800_v7  ;;  %v2812_v11 = vsub.f32 %v2642_v44, %v2800_v7 }
0x2224   :  { %v2807_v27 = vadd.f32 %v2806_v10, %v2804_v19  ;;  %v2813_v12 = vand.u32 2147483647, %v2812_v11 }
0x2226   :  { %v2808_v14 = vmul.f32 %v2807_v27, %v2727_v56  ;;  %v2814_v16 = vadd.f32 %v2813_v12, %v2811_v23  ;;  %v2815_v15 = vsub.f32 %v2642_v44, %v2807_v27 }
0x2228   :  { %v2809_v20 = vadd.f32 %v2808_v14, %v2726_v50  ;;  %v2816_v61 = vand.u32 2147483647, %v2815_v15 }
0x222a   :  { %v2817_v38 = vadd.f32 %v2816_v61, %v2814_v16  ;;  %2823 = vst.msk [vmem:[%s4055_s17 + $0x38] sm:$0xff] %vm97_vm0, %v2809_v20 }
0x222c   :  { %v2818_v18 = vmul.f32 %v2817_v38, %v2643_v46 }
0x222e   :  { %v2821_v22 = vmul.f32 %v2820_v6, %v2818_v18 }
0x2230   :  { %v2822_v33 = vadd.f32 %v2821_v22, %v3996_v35 }
0x2232   :  { %v2824_v24 = vsel %vm97_vm0, %v2822_v33, 0.0 }
0x2233   :  { %2825 = vadd.xlane.f32.xlu1 %v2824_v24 }
0x22c0   :  { %v2826_v25 = vpop.xlane.xlu1 %2825 }
0x22c1   :  { %v2827_v26 = vrot.slane %v2826_v25, 4 }
0x22c3   :  { %v2828_v28 = vadd.f32 %v2827_v26, %v2826_v25 }
0x22c5   :  { %v2829_v29 = vrot.slane %v2828_v28, 2 }
0x22c7   :  { %v2830_v37 = vadd.f32 %v2829_v29, %v2828_v28 }
0x22c9   :  { %v2831_v30 = vrot.slane %v2830_v37, 1 }
0x22cb   :  { %v2832_v31 = vadd.f32 %v2831_v30, %v2830_v37 }
0x22cd   :  { %3248 = vpush %v2832_v31 }
0x22fe   :  { %s3249_s14 = spop %3248 }
0x22ff   :  { %s2836_s7 = smul.f32 0.125, %s3249_s14 }
0x2301   :  { %2838 = sst [smem:[#allocation8]] %s2836_s7 }
0x2302   :  { %3371 = shalt.err (!%p3368_p7)
}
0x2303   :  { %s3383_s30 = smov [#allocation8]  }
0x2304   :  { %2848 = dma.smem_to_hbm %s3383_s30, 16, %s4056_s18, [#allocation6]  }
0x2305   :  { %3374 = dma.done.wait [#allocation6], 16  }
0x2306   :  { %3375 = vsyncadd [#allocation6], 4294967280 }
0x2307   :  { %2854 = sfence }
0x2308   :  { %2855 = vsyncpa [#allocation6], 1 }
0x2309   :  { %2856 = vsyncpa [#allocation7], 1 }

</bundles_post_ra>
